<compile_context>
chip_gen: v7x
topology: tpu7x:2x2x1
jax: 0.10.0
libtpu: 0.0.40
codegen_flags: <defaults>
</compile_context>

<pallas_src>
import math
from functools import partial

import jax
import jax.numpy as jnp
from jax.experimental import pallas as pl
from jax.experimental.pallas import tpu as pltpu


def _gelu_exact(x):
    # PyTorch nn.GELU() default = exact erf formulation.
    return 0.5 * x * (1.0 + jax.lax.erf(x * (1.0 / math.sqrt(2.0))))


def _gelu_tanh(x):
    # tanh approximation; the tanh rides the EUP slot instead of the VALU.
    c = math.sqrt(2.0 / math.pi)
    return 0.5 * x * (1.0 + jnp.tanh(c * (x + 0.044715 * x * x * x)))


def _layernorm_fm(x, gamma_col, beta_col, eps=1e-5):
    """LayerNorm over the feature axis (axis 0) of a (features, pixels) tile.

    E[x], E[x^2] form: the two reductions are independent and run in the
    sublane direction (cheap); 1/N is a compile-time constant multiply.
    gamma_col / beta_col are (features, 1) columns.
    """
    inv_n = 1.0 / float(x.shape[0])
    s1 = jnp.sum(x, axis=0, keepdims=True)          # (1, T)
    s2 = jnp.sum(x * x, axis=0, keepdims=True)      # (1, T)
    mu = s1 * inv_n
    var = s2 * inv_n - mu * mu
    inv = jax.lax.rsqrt(var + eps)
    return (x - mu) * inv * gamma_col + beta_col


def _head_kernel(x_ref,
                 w1_ref, b1_ref, g1_ref, be1_ref,
                 w2_ref, b2_ref, g2_ref, be2_ref,
                 w3_ref, b3_ref,
                 o_ref, *, approx_gelu: bool):
    """Fused 3-layer MLP head: Lin+LN+GELU -> Lin+LN+GELU -> Lin."""
    gelu = _gelu_tanh if approx_gelu else _gelu_exact

    # Channels-first slab (C, T): the NCHW->NHWC permute never materializes.
    x = x_ref[0]

    # Layer 1, feature-major: (hidden, C) @ (C, T) -> (hidden, T), f32.
    h = jnp.dot(w1_ref[...], x, preferred_element_type=jnp.float32)
    h = h + b1_ref[...]                                   # (hidden, 1) bcast
    h = gelu(_layernorm_fm(h, g1_ref[...], be1_ref[...]))

    # Layer 2, feature-major: (hidden, hidden) @ (hidden, T).
    h = jnp.dot(w2_ref[...], h, preferred_element_type=jnp.float32)
    h = h + b2_ref[...]
    h = gelu(_layernorm_fm(h, g2_ref[...], be2_ref[...]))

    # Single aligned transpose to pixel-major, then the output projection so
    # the bias add is a row broadcast and the store is lane-dense.
    h = jnp.transpose(h)                                  # (T, hidden)
    y = jnp.dot(h, w3_ref[...], preferred_element_type=jnp.float32)
    o_ref[0] = (y + b3_ref[...]).astype(o_ref.dtype)


def distillationv2_head_forward(x_nchw, params, *, tile_hw=512,
                                approx_gelu=True):
    """x_nchw: (B, C, H, W). Returns (B, H, W, out_dim)."""
    B, C, H, W = x_nchw.shape
    (w1, b1, g1, be1, w2, b2, g2, be2, w3, b3) = params
    in_dim, hidden = w1.shape
    out_dim = w3.shape[1]
    assert in_dim == C
    assert hidden % 128 == 0, (
        "hidden_dim must be a multiple of 128 for the aligned in-kernel "
        "transpose / feature-major layout (true for typical head configs).")
    # NOTE: out_dim < 128 would force masked vst partial stores; typical
    # teacher embed dims (>= 384) are lane-dense already.

    HW = H * W
    itemsize = x_nchw.dtype.itemsize

    # Pixel tile: a multiple of 128 lanes, no larger than the spatial extent
    # (edge masking handles the remainder; no wrapper pad/slice needed).
    if HW >= 128:
        t = max(128, (min(int(tile_hw), HW) // 128) * 128)
    else:
        t = HW            # tiny spatial extent: full-dim block is legal
    # Keep enough grid steps for megacore sharding / pipeline overlap.
    while t > 128 and B * pl.cdiv(HW, t) < 4:
        t = max(128, ((t // 2) // 128) * 128)

    x3 = x_nchw.reshape(B, C, HW)              # free reshape, no transpose

    # Weights in the layout each layer consumes; all f32. Per-feature vectors
    # as (hidden, 1) columns (feature-major layers), b3 as a (1, out_dim) row.
    w1_fm = jnp.transpose(w1).astype(jnp.float32)     # (hidden, C)
    w2_fm = jnp.transpose(w2).astype(jnp.float32)     # (hidden, hidden)
    w3_pm = w3.astype(jnp.float32)                    # (hidden, out_dim)
    col = lambda a: a.reshape(-1, 1).astype(jnp.float32)
    row = lambda a: a.reshape(1, -1).astype(jnp.float32)

    full2d = lambda d0, d1: pl.BlockSpec((d0, d1), lambda b, s: (0, 0))

    grid = (B, pl.cdiv(HW, t))

    # Advisory cost estimate.
    rows_total = B * HW
    flops = 2 * rows_total * (C * hidden + hidden * hidden + hidden * out_dim)
    transcendentals = 2 * rows_total * hidden
    bytes_accessed = (B * C * HW * itemsize
                      + 4 * (hidden * C + hidden * hidden + hidden * out_dim
                             + 6 * hidden + out_dim)
                      + rows_total * out_dim * itemsize)

    # VMEM budget from the real per-step footprint (double-buffered x/out,
    # resident weights, f32 intermediates), clamped to [32 MiB, 56 MiB] so it
    # is safe on v5e/v6e (128 MiB) and v7x (64 MiB/TC) alike.
    f32b = 4
    est = (2 * C * t * f32b                      # x slab, double buffered
           + 2 * t * out_dim * f32b              # output tile, double buffered
           + 2 * (hidden * C + hidden * hidden + hidden * out_dim
                  + 6 * hidden + out_dim) * f32b # weights / vectors
           + 5 * hidden * t * f32b)              # live f32 intermediates
    vmem_limit = int(min(max(2 * est, 32 * 2**20), 56 * 2**20))

    out = pl.pallas_call(
        partial(_head_kernel, approx_gelu=approx_gelu),
        out_shape=jax.ShapeDtypeStruct((B, HW, out_dim), x_nchw.dtype),
        grid_spec=pltpu.PrefetchScalarGridSpec(
            num_scalar_prefetch=0,
            grid=grid,
            in_specs=[
                pl.BlockSpec((1, C, t), lambda b, s: (b, 0, s)),  # x slab
                full2d(hidden, C),        # w1 (feature-major)
                full2d(hidden, 1),        # b1
                full2d(hidden, 1),        # ln1 gamma
                full2d(hidden, 1),        # ln1 beta
                full2d(hidden, hidden),   # w2 (feature-major)
                full2d(hidden, 1),        # b2
                full2d(hidden, 1),        # ln2 gamma
                full2d(hidden, 1),        # ln2 beta
                full2d(hidden, out_dim),  # w3 (pixel-major)
                full2d(1, out_dim),       # b3
            ],
            out_specs=pl.BlockSpec((1, t, out_dim), lambda b, s: (b, s, 0)),
        ),
        compiler_params=pltpu.CompilerParams(
            dimension_semantics=("parallel", "parallel"),
            vmem_limit_bytes=vmem_limit),
        cost_estimate=pl.CostEstimate(
            flops=flops,
            transcendentals=transcendentals,
            bytes_accessed=bytes_accessed),
    )(x3, w1_fm, col(b1), col(g1), col(be1),
      w2_fm, col(b2), col(g2), col(be2),
      w3_pm, row(b3))

    return out.reshape(B, H, W, out_dim)


def init_params(key, in_dim, hidden_dim, out_dim):
    """Synthetic init matching the module's __init__ shapes.

    Linear weights ~ truncated normal * 0.02 (close to, not bit-identical to,
    PyTorch trunc_normal_(std=0.02)); Linear biases = 0; LayerNorm weight = 1,
    bias = 0 (PyTorch defaults). Weights stored as (in, out) for x @ W.
    """
    k1, k2, k3 = jax.random.split(key, 3)
    std = 0.02
    w1 = (jax.random.truncated_normal(k1, -2.0, 2.0, (in_dim, hidden_dim)) * std
          ).astype(jnp.float32)
    b1 = jnp.zeros((hidden_dim,), jnp.float32)
    g1 = jnp.ones((hidden_dim,), jnp.float32)
    be1 = jnp.zeros((hidden_dim,), jnp.float32)
    w2 = (jax.random.truncated_normal(k2, -2.0, 2.0, (hidden_dim, hidden_dim)) * std
          ).astype(jnp.float32)
    b2 = jnp.zeros((hidden_dim,), jnp.float32)
    g2 = jnp.ones((hidden_dim,), jnp.float32)
    be2 = jnp.zeros((hidden_dim,), jnp.float32)
    w3 = (jax.random.truncated_normal(k3, -2.0, 2.0, (hidden_dim, out_dim)) * std
          ).astype(jnp.float32)
    b3 = jnp.zeros((out_dim,), jnp.float32)
    return (w1, b1, g1, be1, w2, b2, g2, be2, w3, b3)


def _layernorm_ref(x, gamma, beta, eps=1e-5):
    mu = jnp.mean(x, axis=-1, keepdims=True)
    var = jnp.mean((x - mu) ** 2, axis=-1, keepdims=True)
    return (x - mu) * jax.lax.rsqrt(var + eps) * gamma + beta


def _reference_forward(x_nchw, params):
    """Pure-JAX f32 reference mirroring the PyTorch forward (exact-erf GELU)."""
    (w1, b1, g1, be1, w2, b2, g2, be2, w3, b3) = params
    x = jnp.transpose(x_nchw, (0, 2, 3, 1))
    h = x @ w1 + b1
    h = _gelu_exact(_layernorm_ref(h, g1, be1))
    h = h @ w2 + b2
    h = _gelu_exact(_layernorm_ref(h, g2, be2))
    return h @ w3 + b3


if __name__ == "__main__":
    # Small shapes consistent with the module (n_layers=3 configuration).
    # H*W = 144 is deliberately NOT a multiple of the 128-lane tile, so the
    # masked edge-block path (no wrapper pad/slice) is exercised.
    B, C, H, W = 2, 32, 12, 12        # in_dim = C = 32
    hidden_dim, out_dim = 128, 128

    key = jax.random.PRNGKey(0)
    kx, kp = jax.random.split(key)
    x = jax.random.normal(kx, (B, C, H, W), dtype=jnp.float32)
    params = init_params(kp, C, hidden_dim, out_dim)

    out = distillationv2_head_forward(x, params)
    out = jax.block_until_ready(out)

    ref = _reference_forward(x, params)
    assert out.shape == (B, H, W, out_dim)
    # All math is f32; the only deviation is tanh-GELU vs the exact-erf
    # reference (~1e-3 per activation).
    assert jnp.allclose(out, ref, atol=2e-2, rtol=2e-2), "mismatch vs reference"

    print("KERNEL_OK")
</pallas_src>

<mosaic_0001>
module attributes {stable_mosaic.version = 11 : i64} {
  func.func @_head_kernel(%arg0: i32, %arg1: i32, %arg2: memref<1x32x128xf32, #tpu.memory_space<vmem>>, %arg3: memref<128x32xf32, #tpu.memory_space<vmem>>, %arg4: memref<128x1xf32, #tpu.memory_space<vmem>>, %arg5: memref<128x1xf32, #tpu.memory_space<vmem>>, %arg6: memref<128x1xf32, #tpu.memory_space<vmem>>, %arg7: memref<128x128xf32, #tpu.memory_space<vmem>>, %arg8: memref<128x1xf32, #tpu.memory_space<vmem>>, %arg9: memref<128x1xf32, #tpu.memory_space<vmem>>, %arg10: memref<128x1xf32, #tpu.memory_space<vmem>>, %arg11: memref<128x128xf32, #tpu.memory_space<vmem>>, %arg12: memref<1x128xf32, #tpu.memory_space<vmem>>, %arg13: memref<1x128x128xf32, #tpu.memory_space<vmem>>) attributes {dimension_semantics = [#tpu.dimension_semantics<parallel>, #tpu.dimension_semantics<parallel>], iteration_bounds = array<i64: 2, 2>, scalar_prefetch = 0 : i64, scratch_operands = 0 : i64, tpu.core_type = #tpu.core_type<tc>, window_params = [{transform_indices = @transform_0, window_bounds = array<i64: 1, 32, 128>}, {pipeline_mode = #tpu.pipeline_mode<synchronous>, transform_indices = @transform_1, window_bounds = array<i64: 128, 32>}, {pipeline_mode = #tpu.pipeline_mode<synchronous>, transform_indices = @transform_2, window_bounds = array<i64: 128, 1>}, {pipeline_mode = #tpu.pipeline_mode<synchronous>, transform_indices = @transform_3, window_bounds = array<i64: 128, 1>}, {pipeline_mode = #tpu.pipeline_mode<synchronous>, transform_indices = @transform_4, window_bounds = array<i64: 128, 1>}, {pipeline_mode = #tpu.pipeline_mode<synchronous>, transform_indices = @transform_5, window_bounds = array<i64: 128, 128>}, {pipeline_mode = #tpu.pipeline_mode<synchronous>, transform_indices = @transform_6, window_bounds = array<i64: 128, 1>}, {pipeline_mode = #tpu.pipeline_mode<synchronous>, transform_indices = @transform_7, window_bounds = array<i64: 128, 1>}, {pipeline_mode = #tpu.pipeline_mode<synchronous>, transform_indices = @transform_8, window_bounds = array<i64: 128, 1>}, {pipeline_mode = #tpu.pipeline_mode<synchronous>, transform_indices = @transform_9, window_bounds = array<i64: 128, 128>}, {pipeline_mode = #tpu.pipeline_mode<synchronous>, transform_indices = @transform_10, window_bounds = array<i64: 1, 128>}, {transform_indices = @transform_11, window_bounds = array<i64: 1, 128, 128>}]} {
    %c0 = arith.constant 0 : index
    %c0_0 = arith.constant 0 : index
    %c0_1 = arith.constant 0 : index
    %0 = vector.load %arg2[%c0, %c0_0, %c0_1] : memref<1x32x128xf32, #tpu.memory_space<vmem>>, vector<1x32x128xf32>
    %1 = vector.shape_cast %0 : vector<1x32x128xf32> to vector<32x128xf32>
    %c0_2 = arith.constant 0 : index
    %c0_3 = arith.constant 0 : index
    %2 = vector.load %arg3[%c0_2, %c0_3] : memref<128x32xf32, #tpu.memory_space<vmem>>, vector<128x32xf32>
    %cst = arith.constant dense<0.000000e+00> : vector<128x128xf32>
    %3 = tpu.matmul %2, %1, %cst {dimension_numbers = #tpu.dot_dimension_numbers<[1], [0], [0], [1], [0, 0, 1, 1], [], []>} : vector<128x32xf32>, vector<32x128xf32>, vector<128x128xf32> -> vector<128x128xf32>
    %c0_4 = arith.constant 0 : index
    %c0_5 = arith.constant 0 : index
    %4 = vector.load %arg4[%c0_4, %c0_5] : memref<128x1xf32, #tpu.memory_space<vmem>>, vector<128x1xf32>
    %5 = vector.broadcast %4 : vector<128x1xf32> to vector<128x128xf32>
    %6 = arith.addf %3, %5 : vector<128x128xf32>
    %c0_6 = arith.constant 0 : index
    %c0_7 = arith.constant 0 : index
    %7 = vector.load %arg5[%c0_6, %c0_7] : memref<128x1xf32, #tpu.memory_space<vmem>>, vector<128x1xf32>
    %c0_8 = arith.constant 0 : index
    %c0_9 = arith.constant 0 : index
    %8 = vector.load %arg6[%c0_8, %c0_9] : memref<128x1xf32, #tpu.memory_space<vmem>>, vector<128x1xf32>
    %cst_10 = arith.constant dense<0.000000e+00> : vector<128xf32>
    %9 = vector.multi_reduction <add>, %6, %cst_10 [0] : vector<128x128xf32> to vector<128xf32>
    %10 = vector.shape_cast %9 : vector<128xf32> to vector<1x128xf32>
    %11 = arith.mulf %6, %6 : vector<128x128xf32>
    %cst_11 = arith.constant dense<0.000000e+00> : vector<128xf32>
    %12 = vector.multi_reduction <add>, %11, %cst_11 [0] : vector<128x128xf32> to vector<128xf32>
    %13 = vector.shape_cast %12 : vector<128xf32> to vector<1x128xf32>
    %cst_12 = arith.constant 7.812500e-03 : f32
    %14 = vector.broadcast %cst_12 : f32 to vector<1x128xf32>
    %15 = arith.mulf %10, %14 : vector<1x128xf32>
    %cst_13 = arith.constant 7.812500e-03 : f32
    %16 = vector.broadcast %cst_13 : f32 to vector<1x128xf32>
    %17 = arith.mulf %13, %16 : vector<1x128xf32>
    %18 = arith.mulf %15, %15 : vector<1x128xf32>
    %19 = arith.subf %17, %18 : vector<1x128xf32>
    %cst_14 = arith.constant 9.99999974E-6 : f32
    %20 = vector.broadcast %cst_14 : f32 to vector<1x128xf32>
    %21 = arith.addf %19, %20 : vector<1x128xf32>
    %22 = math.rsqrt %21 : vector<1x128xf32>
    %23 = vector.broadcast %15 : vector<1x128xf32> to vector<128x128xf32>
    %24 = arith.subf %6, %23 : vector<128x128xf32>
    %25 = vector.broadcast %22 : vector<1x128xf32> to vector<128x128xf32>
    %26 = arith.mulf %24, %25 : vector<128x128xf32>
    %27 = vector.broadcast %7 : vector<128x1xf32> to vector<128x128xf32>
    %28 = arith.mulf %26, %27 : vector<128x128xf32>
    %29 = vector.broadcast %8 : vector<128x1xf32> to vector<128x128xf32>
    %30 = arith.addf %28, %29 : vector<128x128xf32>
    %cst_15 = arith.constant 5.000000e-01 : f32
    %31 = vector.broadcast %cst_15 : f32 to vector<128x128xf32>
    %32 = arith.mulf %31, %30 : vector<128x128xf32>
    %cst_16 = arith.constant 4.471500e-02 : f32
    %33 = vector.broadcast %cst_16 : f32 to vector<128x128xf32>
    %34 = arith.mulf %33, %30 : vector<128x128xf32>
    %35 = arith.mulf %34, %30 : vector<128x128xf32>
    %36 = arith.mulf %35, %30 : vector<128x128xf32>
    %37 = arith.addf %30, %36 : vector<128x128xf32>
    %cst_17 = arith.constant 0.797884583 : f32
    %38 = vector.broadcast %cst_17 : f32 to vector<128x128xf32>
    %39 = arith.mulf %38, %37 : vector<128x128xf32>
    %40 = math.tanh %39 : vector<128x128xf32>
    %cst_18 = arith.constant 1.000000e+00 : f32
    %41 = vector.broadcast %cst_18 : f32 to vector<128x128xf32>
    %42 = arith.addf %41, %40 : vector<128x128xf32>
    %43 = arith.mulf %32, %42 : vector<128x128xf32>
    %c0_19 = arith.constant 0 : index
    %c0_20 = arith.constant 0 : index
    %44 = vector.load %arg7[%c0_19, %c0_20] : memref<128x128xf32, #tpu.memory_space<vmem>>, vector<128x128xf32>
    %cst_21 = arith.constant dense<0.000000e+00> : vector<128x128xf32>
    %45 = tpu.matmul %44, %43, %cst_21 {dimension_numbers = #tpu.dot_dimension_numbers<[1], [0], [0], [1], [0, 0, 1, 1], [], []>} : vector<128x128xf32>, vector<128x128xf32>, vector<128x128xf32> -> vector<128x128xf32>
    %c0_22 = arith.constant 0 : index
    %c0_23 = arith.constant 0 : index
    %46 = vector.load %arg8[%c0_22, %c0_23] : memref<128x1xf32, #tpu.memory_space<vmem>>, vector<128x1xf32>
    %47 = vector.broadcast %46 : vector<128x1xf32> to vector<128x128xf32>
    %48 = arith.addf %45, %47 : vector<128x128xf32>
    %c0_24 = arith.constant 0 : index
    %c0_25 = arith.constant 0 : index
    %49 = vector.load %arg9[%c0_24, %c0_25] : memref<128x1xf32, #tpu.memory_space<vmem>>, vector<128x1xf32>
    %c0_26 = arith.constant 0 : index
    %c0_27 = arith.constant 0 : index
    %50 = vector.load %arg10[%c0_26, %c0_27] : memref<128x1xf32, #tpu.memory_space<vmem>>, vector<128x1xf32>
    %cst_28 = arith.constant dense<0.000000e+00> : vector<128xf32>
    %51 = vector.multi_reduction <add>, %48, %cst_28 [0] : vector<128x128xf32> to vector<128xf32>
    %52 = vector.shape_cast %51 : vector<128xf32> to vector<1x128xf32>
    %53 = arith.mulf %48, %48 : vector<128x128xf32>
    %cst_29 = arith.constant dense<0.000000e+00> : vector<128xf32>
    %54 = vector.multi_reduction <add>, %53, %cst_29 [0] : vector<128x128xf32> to vector<128xf32>
    %55 = vector.shape_cast %54 : vector<128xf32> to vector<1x128xf32>
    %cst_30 = arith.constant 7.812500e-03 : f32
    %56 = vector.broadcast %cst_30 : f32 to vector<1x128xf32>
    %57 = arith.mulf %52, %56 : vector<1x128xf32>
    %cst_31 = arith.constant 7.812500e-03 : f32
    %58 = vector.broadcast %cst_31 : f32 to vector<1x128xf32>
    %59 = arith.mulf %55, %58 : vector<1x128xf32>
    %60 = arith.mulf %57, %57 : vector<1x128xf32>
    %61 = arith.subf %59, %60 : vector<1x128xf32>
    %cst_32 = arith.constant 9.99999974E-6 : f32
    %62 = vector.broadcast %cst_32 : f32 to vector<1x128xf32>
    %63 = arith.addf %61, %62 : vector<1x128xf32>
    %64 = math.rsqrt %63 : vector<1x128xf32>
    %65 = vector.broadcast %57 : vector<1x128xf32> to vector<128x128xf32>
    %66 = arith.subf %48, %65 : vector<128x128xf32>
    %67 = vector.broadcast %64 : vector<1x128xf32> to vector<128x128xf32>
    %68 = arith.mulf %66, %67 : vector<128x128xf32>
    %69 = vector.broadcast %49 : vector<128x1xf32> to vector<128x128xf32>
    %70 = arith.mulf %68, %69 : vector<128x128xf32>
    %71 = vector.broadcast %50 : vector<128x1xf32> to vector<128x128xf32>
    %72 = arith.addf %70, %71 : vector<128x128xf32>
    %cst_33 = arith.constant 5.000000e-01 : f32
    %73 = vector.broadcast %cst_33 : f32 to vector<128x128xf32>
    %74 = arith.mulf %73, %72 : vector<128x128xf32>
    %cst_34 = arith.constant 4.471500e-02 : f32
    %75 = vector.broadcast %cst_34 : f32 to vector<128x128xf32>
    %76 = arith.mulf %75, %72 : vector<128x128xf32>
    %77 = arith.mulf %76, %72 : vector<128x128xf32>
    %78 = arith.mulf %77, %72 : vector<128x128xf32>
    %79 = arith.addf %72, %78 : vector<128x128xf32>
    %cst_35 = arith.constant 0.797884583 : f32
    %80 = vector.broadcast %cst_35 : f32 to vector<128x128xf32>
    %81 = arith.mulf %80, %79 : vector<128x128xf32>
    %82 = math.tanh %81 : vector<128x128xf32>
    %cst_36 = arith.constant 1.000000e+00 : f32
    %83 = vector.broadcast %cst_36 : f32 to vector<128x128xf32>
    %84 = arith.addf %83, %82 : vector<128x128xf32>
    %85 = arith.mulf %74, %84 : vector<128x128xf32>
    %86 = tpu.transpose %85, [1, 0] : vector<128x128xf32> -> vector<128x128xf32>
    %c0_37 = arith.constant 0 : index
    %c0_38 = arith.constant 0 : index
    %87 = vector.load %arg11[%c0_37, %c0_38] : memref<128x128xf32, #tpu.memory_space<vmem>>, vector<128x128xf32>
    %cst_39 = arith.constant dense<0.000000e+00> : vector<128x128xf32>
    %88 = tpu.matmul %86, %87, %cst_39 {dimension_numbers = #tpu.dot_dimension_numbers<[1], [0], [0], [1], [0, 0, 1, 1], [], []>} : vector<128x128xf32>, vector<128x128xf32>, vector<128x128xf32> -> vector<128x128xf32>
    %c0_40 = arith.constant 0 : index
    %c0_41 = arith.constant 0 : index
    %89 = vector.load %arg12[%c0_40, %c0_41] : memref<1x128xf32, #tpu.memory_space<vmem>>, vector<1x128xf32>
    %90 = vector.broadcast %89 : vector<1x128xf32> to vector<128x128xf32>
    %91 = arith.addf %88, %90 : vector<128x128xf32>
    %c0_42 = arith.constant 0 : index
    %c0_43 = arith.constant 0 : index
    %c0_44 = arith.constant 0 : index
    %92 = vector.load %arg13[%c0_42, %c0_43, %c0_44] : memref<1x128x128xf32, #tpu.memory_space<vmem>>, vector<1x128x128xf32>
    %93 = vector.shape_cast %92 : vector<1x128x128xf32> to vector<128x128xf32>
    %94 = vector.shape_cast %91 : vector<128x128xf32> to vector<1x128x128xf32>
    tpu.vector_store %arg13[%c0_42, %c0_43, %c0_44], %94 {strides = array<i32>} : memref<1x128x128xf32, #tpu.memory_space<vmem>>, vector<1x128x128xf32>,
    return
  }
  func.func @transform_0(%arg0: i32, %arg1: i32) -> (i32, i32, i32) {
    %c0_i32 = arith.constant 0 : i32
    %c0_i32_0 = arith.constant 0 : i32
    return %arg0, %c0_i32, %arg1 : i32, i32, i32
  }
  func.func @transform_1(%arg0: i32, %arg1: i32) -> (i32, i32) {
    %c0_i32 = arith.constant 0 : i32
    %c0_i32_0 = arith.constant 0 : i32
    %c0_i32_1 = arith.constant 0 : i32
    return %c0_i32, %c0_i32_0 : i32, i32
  }
  func.func @transform_2(%arg0: i32, %arg1: i32) -> (i32, i32) {
    %c0_i32 = arith.constant 0 : i32
    %c0_i32_0 = arith.constant 0 : i32
    %c0_i32_1 = arith.constant 0 : i32
    return %c0_i32, %c0_i32_0 : i32, i32
  }
  func.func @transform_3(%arg0: i32, %arg1: i32) -> (i32, i32) {
    %c0_i32 = arith.constant 0 : i32
    %c0_i32_0 = arith.constant 0 : i32
    %c0_i32_1 = arith.constant 0 : i32
    return %c0_i32, %c0_i32_0 : i32, i32
  }
  func.func @transform_4(%arg0: i32, %arg1: i32) -> (i32, i32) {
    %c0_i32 = arith.constant 0 : i32
    %c0_i32_0 = arith.constant 0 : i32
    %c0_i32_1 = arith.constant 0 : i32
    return %c0_i32, %c0_i32_0 : i32, i32
  }
  func.func @transform_5(%arg0: i32, %arg1: i32) -> (i32, i32) {
    %c0_i32 = arith.constant 0 : i32
    %c0_i32_0 = arith.constant 0 : i32
    %c0_i32_1 = arith.constant 0 : i32
    return %c0_i32, %c0_i32_0 : i32, i32
  }
  func.func @transform_6(%arg0: i32, %arg1: i32) -> (i32, i32) {
    %c0_i32 = arith.constant 0 : i32
    %c0_i32_0 = arith.constant 0 : i32
    %c0_i32_1 = arith.constant 0 : i32
    return %c0_i32, %c0_i32_0 : i32, i32
  }
  func.func @transform_7(%arg0: i32, %arg1: i32) -> (i32, i32) {
    %c0_i32 = arith.constant 0 : i32
    %c0_i32_0 = arith.constant 0 : i32
    %c0_i32_1 = arith.constant 0 : i32
    return %c0_i32, %c0_i32_0 : i32, i32
  }
  func.func @transform_8(%arg0: i32, %arg1: i32) -> (i32, i32) {
    %c0_i32 = arith.constant 0 : i32
    %c0_i32_0 = arith.constant 0 : i32
    %c0_i32_1 = arith.constant 0 : i32
    return %c0_i32, %c0_i32_0 : i32, i32
  }
  func.func @transform_9(%arg0: i32, %arg1: i32) -> (i32, i32) {
    %c0_i32 = arith.constant 0 : i32
    %c0_i32_0 = arith.constant 0 : i32
    %c0_i32_1 = arith.constant 0 : i32
    return %c0_i32, %c0_i32_0 : i32, i32
  }
  func.func @transform_10(%arg0: i32, %arg1: i32) -> (i32, i32) {
    %c0_i32 = arith.constant 0 : i32
    %c0_i32_0 = arith.constant 0 : i32
    %c0_i32_1 = arith.constant 0 : i32
    return %c0_i32, %c0_i32_0 : i32, i32
  }
  func.func @transform_11(%arg0: i32, %arg1: i32) -> (i32, i32, i32) {
    %c0_i32 = arith.constant 0 : i32
    %c0_i32_0 = arith.constant 0 : i32
    return %arg0, %arg1, %c0_i32 : i32, i32, i32
  }
}

</mosaic_0001>

<bundles_post_ra>
// kernel: tpu_custom_call.1
= control target key start
LH: loop header
LB: loop body
LE: loop exit
PB: predicated region body
PF: predicated region fallthrough
CT: control target
= control target key end

     0   :  { %s4183_s0 = inlined_call_operand.vmem [shape: f32[2,32,144], index: 0, kind: input, shape index: {}]   ;;  %s4184_s1 = inlined_call_operand.vmem [shape: f32[128,32], index: 1, kind: input, shape index: {}]   ;;  %s4185_s2 = inlined_call_operand.vmem [shape: f32[128,1], index: 2, kind: input, shape index: {}]   ;;  %s4186_s3 = inlined_call_operand.vmem [shape: f32[128,1], index: 3, kind: input, shape index: {}]   ;;  %s4187_s4 = inlined_call_operand.vmem [shape: f32[128,1], index: 4, kind: input, shape index: {}]   ;;  %s4188_s5 = inlined_call_operand.vmem [shape: f32[128,128], index: 5, kind: input, shape index: {}]   ;;  %s4189_s6 = inlined_call_operand.vmem [shape: f32[128,1], index: 6, kind: input, shape index: {}]   ;;  %s4190_s7 = inlined_call_operand.vmem [shape: f32[128,1], index: 7, kind: input, shape index: {}]   ;;  %s4191_s8 = inlined_call_operand.vmem [shape: f32[128,1], index: 8, kind: input, shape index: {}]   ;;  %s4192_s9 = inlined_call_operand.vmem [shape: f32[128,128], index: 9, kind: input, shape index: {}]   ;;  %s4193_s10 = inlined_call_operand.vmem [shape: f32[1,128], index: 10, kind: input, shape index: {}]   ;;  %s4194_s11 = inlined_call_operand.hbm [shape: f32[2,144,128], index: 11, kind: output, shape index: {}]  }
   0x1   :  { %4201 = sst [smem:[#allocation10_spill]] %s4183_s0 }
   0x2   :  { %4202 = sst [smem:[#allocation11_spill]] %s4194_s11 }
   0x3   :  { %16 = vsyncpa [#allocation4], 0 }
   0x4   :  { %18 = vsyncpa [#allocation4 + $0x1], 0  ;;  %s2927_s17 = smov 0   ;;  %s2929_s18 = smov 0  }
   0x5   :  { %s2931_s19 = smov 0   ;;  %s2933_s20 = smov 0  }
   0x6   :  { %s2935_s21 = smov 0   ;;  %s2937_s22 = smov 0  }
   0x7   :  { %s2939_s23 = smov 0   ;;  %s2941_s24 = smov 0  }
   0x8 LB: > { %4203 = sst [smem:[#allocation6_spill]] %s2833_s17  ;;  %s2271_s25 = sadd.s32 4294967295, %s2861_s24   ;;  %s2861_s24 = sphi %s2941_s24, %s24_s24   ;;  %s2857_s23 = sphi %s2939_s23, %s4223_s23   ;;  %s2853_s22 = sphi %s2937_s22, %s4222_s22   ;;  %s2849_s21 = sphi %s2935_s21, %s4221_s21   ;;  %s2845_s20 = sphi %s2933_s20, %s4220_s20   ;;  %s2841_s19 = sphi %s2931_s19, %s4219_s19   ;;  %s2837_s18 = sphi %s2929_s18, %s4218_s18   ;;  %s2833_s17 = sphi %s2927_s17, %s4217_s17  }
   0x9   : > { %s2272_s26 = sadd.s32 4294967294, %s2861_s24   ;;  %s33_s27 = sadd.s32 1, %s2853_s22 }
   0xa   : > { %p34_p0 = scmp.ge.s32.totalorder %s33_s27, 2  ;;  %s36_s28 = sadd.s32 1, %s2857_s23 }
   0xb   : > { %p52_p1 = scmp.ne.s32.totalorder %s2841_s19, %s2837_s18  ;;  %p53_p2 = scmp.eq.s32.totalorder %s2861_s24, 0 }
   0xc   : > { %s4225_s27 = smov (%p34_p0, %s33_s27), 0  ;;  %s4227_s28 = smov (!%p34_p0, %s36_s28), %s2857_s23 }
   0xd   : > { %4204 = sst [smem:[#allocation7_spill]] %s4225_s27  ;;  %s41_s29 = ssub.s32 %s2853_s22, %s4225_s27 }
   0xe   : > { %p2979_p3 = por %p53_p2, %p52_p1  ;;  %p38_p4 = scmp.ge.s32.totalorder %s4227_s28, 2 }
   0xf   : > { %p294_p5 = scmp.eq.s32.totalorder %s2271_s25, 3  ;;  %p299_p6 = scmp.ne.s32.totalorder %s2837_s18, %s2833_s17 }
  0x10   : > { %p300_p7 = scmp.eq.s32.totalorder %s2272_s26, 3  ;;  %s4229_s28 = smov (%p38_p4, %s4227_s28), 0 }
  0x11   : > { %4206 = sst [smem:[#allocation8_spill]] %s4229_s28  ;;  %p2987_p8 = por %p294_p5, %p52_p1 }
  0x12   : > { %p2991_p9 = por %p300_p7, %p299_p6  ;;  %s40_s14 = ssub.s32 %s2857_s23, %s4229_s28 }
  0x13   : > { %s42_s15 = sor.u32 %s41_s29, %s40_s14  ;;  %s45_s16 = sadd.s32 1, %s2841_s19 }
  0x14   : > { %s4208_s13 = scalar_select %p2991_p9, 1, 0 }
  0x15   : > { %p43_p10 = scmp.eq.s32.totalorder %s42_s15, 0  ;;  %p2274_p11 = scmp.ge.s32.totalorder %s2861_s24, 4 }
  0x16   : > { %4209 = sst [smem:[#allocation9_spill]] %s4208_s13 }
  0x17   : > { %s2999_s27 = scalar_select %p43_p10, %s2841_s19, %s45_s16  }
  0x18   : > { %346 = sbr.rel (%p2274_p11) target bundleno = 43 (0x2b), region = 56 }
  0x1f   : > { %349 = sbr.rel (!%p2979_p3) target bundleno = 43 (0x2b), region = 60  ;;  %s351_s25 = sand.u32 (%p2979_p3), 1, %s2841_s19  }
  0x20   : > { %s2276_s26 = sshll.u32 (%p2979_p3), %s2857_s23, 3  ;;  %s2275_s17 = sshll.u32 (%p2979_p3), %s351_s25, 5 }
  0x21   : > { %s355_s11 = sadd.s32 (%p2979_p3), %s2853_s22, %s2276_s26  ;;  %s4210_s0 = sld [smem:[#allocation10_spill]] (%p2979_p3) }
  0x22   : > { %s2277_s13 = sshll.u32 (%p2979_p3), %s355_s11, 3  ;;  %s353_s15 = scalar_lea.vmem (%p2979_p3), [#allocation2], %s2275_s17 }
  0x27   : > { %s357_s14 = scalar_lea.vmem %s4210_s0, %s2277_s13 }
  0x28   : > { %v391_v0 = vld [vmem:[%s357_s14] sm:$0xff]  ;;  %v393_v1 = vld [vmem:[%s357_s14 + $0x10] sm:$0xff] }
  0x29   : > { %v395_v2 = vld [vmem:[%s357_s14 + $0x20] sm:$0xff]  ;;  %392 = vst [vmem:[%s353_s15] sm:$0xff] %v391_v0  ;;  %394 = vst [vmem:[%s353_s15 + $0x8] sm:$0xff] %v393_v1  ;;  %v397_v3 = vld [vmem:[%s357_s14 + $0x30] sm:$0xff] }
  0x2a   : > { %396 = vst [vmem:[%s353_s15 + $0x10] sm:$0xff] %v395_v2  ;;  %398 = vst [vmem:[%s353_s15 + $0x18] sm:$0xff] %v397_v3 }
  0x2b PF: > { %p2278_p12 = scmp.ge.s32.totalorder %s2861_s24, 1  ;;  %p403_p13 = scmp.lt.s32.totalorder %s2861_s24, 5 }
  0x2d   : > { %p404_p0 = pnand %p2278_p12, %p403_p13 }
  0x2e   : > { %v476_v4 = vld [vmem:[%s4185_s2 + $0x10] sm:$0xff] (!%p404_p0)  ;;  %v474_v5 = vld [vmem:[%s4185_s2] sm:$0xff] (!%p404_p0)  ;;  %s3019_s13 = sand.u32 (!%p404_p0), 1, %s2837_s18   ;;  %vm570_vm0 = vcmask (!%p404_p0), 261120   ;;  %v2863_v6 = vmov (!%p404_p0), 0   ;;  %v477_v7 = vld [vmem:[%s4185_s2 + $0x18] sm:$0xff] (!%p404_p0) }
  0x2f   : > { %407 = sbr.rel (%p404_p0) target bundleno = 1156 (0x484), region = 98  ;;  %2698 = vset.pattern.permute.xlu1 (!%p404_p0), %v2863_v6  ;;  %2697 = vset.pattern.permute.xlu0 (!%p404_p0), %v2863_v6  ;;  %s2279_s16 = sshll.u32 (!%p404_p0), %s3019_s13, 5  ;;  %v475_v8 = vld [vmem:[%s4185_s2 + $0x8] sm:$0xff] (!%p404_p0)  ;;  %v458_v9 = vld [vmem:[%s4184_s1] sm:$0xff] (!%p404_p0)  ;;  %v481_v18 = vld [vmem:[%s4185_s2 + $0x38] sm:$0xff] (!%p404_p0) }
  0x30   : > { %502 = vperm.xlu1 (!%p404_p0), %2698, %v476_v4   ;;  %492 = vperm.xlu0 (!%p404_p0), %2697, %v474_v5   ;;  %s412_s28 = scalar_lea.vmem (!%p404_p0), [#allocation2], %s2279_s16  ;;  %v479_v16 = vld [vmem:[%s4185_s2 + $0x28] sm:$0xff] (!%p404_p0)  ;;  %v478_v17 = vld [vmem:[%s4185_s2 + $0x20] sm:$0xff] (!%p404_p0)  ;;  %v480_v19 = vld [vmem:[%s4185_s2 + $0x30] sm:$0xff] (!%p404_p0)  ;;  %s2280_s11 = sshll.u32 (!%p404_p0), %s3019_s13, 7 }
  0x31   : > { %v454_v10 = vld [vmem:[%s412_s28] sm:$0xff] (!%p404_p0)  ;;  %v455_v11 = vld [vmem:[%s412_s28 + $0x8] sm:$0xff] (!%p404_p0)  ;;  %v456_v12 = vld [vmem:[%s412_s28 + $0x10] sm:$0xff] (!%p404_p0)  ;;  %2399 = vmatprep.mubr.msk.f32.mxu0 (!%p404_p0), %vm570_vm0, %v458_v9  ;;  %s4092_s17 = scalar_lea.vmem (!%p404_p0), [#allocation3], %s2280_s11  ;;  %s4200_s25 = scalar_lea.sflag (!%p404_p0), [#allocation4], %s3019_s13 }
  0x32   : > { %v2535_v13 = vpack.c.bf16 (!%p404_p0), %v455_v11, %v454_v10  ;;  %v457_v14 = vld [vmem:[%s412_s28 + $0x18] sm:$0xff] (!%p404_p0)  ;;  %v459_v20 = vld [vmem:[%s4184_s1 + $0x8] sm:$0xff] (!%p404_p0)  ;;  %v460_v21 = vld [vmem:[%s4184_s1 + $0x10] sm:$0xff] (!%p404_p0) }
  0x33   : > { %v2539_v15 = vpack.c.bf16 (!%p404_p0), %v457_v14, %v456_v12  ;;  %v483_v22 = vld [vmem:[%s4185_s2 + $0x48] sm:$0xff] (!%p404_p0)  ;;  %v482_v23 = vld [vmem:[%s4185_s2 + $0x40] sm:$0xff] (!%p404_p0)  ;;  %v461_v24 = vld [vmem:[%s4184_s1 + $0x18] sm:$0xff] (!%p404_p0) }
  0x34   : > { %507 = vperm.xlu1 (!%p404_p0), %2698, %v477_v7   ;;  %497 = vperm.xlu0 (!%p404_p0), %2697, %v475_v8   ;;  %v462_v25 = vld [vmem:[%s4184_s1 + $0x20] sm:$0xff] (!%p404_p0)  ;;  %v485_v26 = vld [vmem:[%s4185_s2 + $0x58] sm:$0xff] (!%p404_p0)  ;;  %v484_v27 = vld [vmem:[%s4185_s2 + $0x50] sm:$0xff] (!%p404_p0) }
  0x35   : > { %2536 = vmatprep.subr.bf16.mxu0 (!%p404_p0), %v2535_v13  ;;  %v463_v28 = vld [vmem:[%s4184_s1 + $0x28] sm:$0xff] (!%p404_p0)  ;;  %v464_v29 = vld [vmem:[%s4184_s1 + $0x30] sm:$0xff] (!%p404_p0)  ;;  %v486_v31 = vld [vmem:[%s4185_s2 + $0x60] sm:$0xff] (!%p404_p0) }
  0x36   : > { %2538 = vmatpush3.bf16.msra.mxu0 %v2535_v13  ;;  %v487_v30 = vld [vmem:[%s4185_s2 + $0x68] sm:$0xff]  ;;  %v465_v32 = vld [vmem:[%s4184_s1 + $0x38] sm:$0xff]  ;;  %v466_v33 = vld [vmem:[%s4184_s1 + $0x40] sm:$0xff]  ;;  %s2299_s26 = sshll.u32 (%p2987_p8), %s2845_s20, 4 }
  0x37   : > { %2540 = vmatprep.subr.bf16.mxu0 %v2539_v15  ;;  %v489_v34 = vld [vmem:[%s4185_s2 + $0x78] sm:$0xff]  ;;  %v488_v35 = vld [vmem:[%s4185_s2 + $0x70] sm:$0xff]  ;;  %v467_v36 = vld [vmem:[%s4184_s1 + $0x48] sm:$0xff]  ;;  %s2174_s16 = ssub.s32 (%p2987_p8), 18, %s2299_s26 }
  0x38   : > { %517 = vperm.xlu1 %2698, %v479_v16   ;;  %512 = vperm.xlu0 %2697, %v478_v17   ;;  %v468_v37 = vld [vmem:[%s4184_s1 + $0x50] sm:$0xff]  ;;  %v765_v38 = vld [vmem:[%s4186_s3 + $0x8] sm:$0xff]  ;;  %v764_v39 = vld [vmem:[%s4186_s3] sm:$0xff]  ;;  %p2175_p1 = scmp.lt.s32.totalorder (%p2987_p8), %s2174_s16, 16 }
  0x39   : > { %v469_v40 = vld [vmem:[%s4184_s1 + $0x58] sm:$0xff]  ;;  %v470_v41 = vld [vmem:[%s4184_s1 + $0x60] sm:$0xff]  ;;  %v781_v42 = vld [vmem:[%s4187_s4 + $0x8] sm:$0xff] }
  0x3a   : > { %2542 = vmatpush3.bf16.msra.mxu0 %v2539_v15  ;;  %v780_v43 = vld [vmem:[%s4187_s4] sm:$0xff]  ;;  %v471_v44 = vld [vmem:[%s4184_s1 + $0x68] sm:$0xff]  ;;  %v472_v45 = vld [vmem:[%s4184_s1 + $0x70] sm:$0xff] }
  0x3b   : > { %v767_v46 = vld [vmem:[%s4186_s3 + $0x18] sm:$0xff]  ;;  %v766_v47 = vld [vmem:[%s4186_s3 + $0x10] sm:$0xff]  ;;  %v769_v51 = vld [vmem:[%s4186_s3 + $0x28] sm:$0xff] }
  0x3c   : > { %527 = vperm.xlu1 %2698, %v481_v18   ;;  %522 = vperm.xlu0 %2697, %v480_v19   ;;  %v473_v48 = vld [vmem:[%s4184_s1 + $0x78] sm:$0xff]  ;;  %v782_v50 = vld [vmem:[%s4187_s4 + $0x10] sm:$0xff]  ;;  %v768_v52 = vld [vmem:[%s4186_s3 + $0x20] sm:$0xff] }
  0x3d   : > { %2400 = vmatmul.mubr.msk.f32.vlgmr.msra.gmra.mrb[0].mxu0 %vm570_vm0, %v459_v20  ;;  %v783_v49 = vld [vmem:[%s4187_s4 + $0x18] sm:$0xff]  ;;  %v785_v53 = vld [vmem:[%s4187_s4 + $0x28] sm:$0xff]  ;;  %v784_v54 = vld [vmem:[%s4187_s4 + $0x20] sm:$0xff] }
  0x3e   : > { %2402 = vmatprep.mubr.msk.f32.mxu0 %vm570_vm0, %v460_v21  ;;  %v771_v55 = vld [vmem:[%s4186_s3 + $0x38] sm:$0xff]  ;;  %v770_v56 = vld [vmem:[%s4186_s3 + $0x30] sm:$0xff]  ;;  %v773_v59 = vld [vmem:[%s4186_s3 + $0x48] sm:$0xff] }
  0x3f   : > { %v787_v57 = vld [vmem:[%s4187_s4 + $0x38] sm:$0xff]  ;;  %v786_v58 = vld [vmem:[%s4187_s4 + $0x30] sm:$0xff]  ;;  %v772_v60 = vld [vmem:[%s4186_s3 + $0x40] sm:$0xff] }
  0x40   : > { %537 = vperm.xlu1 %2698, %v483_v22   ;;  %532 = vperm.xlu0 %2697, %v482_v23   ;;  %v789_v61 = vld [vmem:[%s4187_s4 + $0x48] sm:$0xff]  ;;  %v788_v62 = vld [vmem:[%s4187_s4 + $0x40] sm:$0xff]  ;;  %v775_v63 = vld [vmem:[%s4186_s3 + $0x58] sm:$0xff] }
  0x41   : > { %2403 = vmatmul.mubr.msk.f32.gmra.mrb[2].mxu0 %vm570_vm0, %v461_v24  ;;  %v774_v0 = vld [vmem:[%s4186_s3 + $0x50] sm:$0xff]  ;;  %v791_v1 = vld [vmem:[%s4187_s4 + $0x58] sm:$0xff]  ;;  %v777_v3 = vld [vmem:[%s4186_s3 + $0x68] sm:$0xff] }
  0x42   : > { %2405 = vmatprep.mubr.msk.f32.mxu0 %vm570_vm0, %v462_v25  ;;  %v790_v2 = vld [vmem:[%s4187_s4 + $0x50] sm:$0xff]  ;;  %v776_v4 = vld [vmem:[%s4186_s3 + $0x60] sm:$0xff]  ;;  %v793_v5 = vld [vmem:[%s4187_s4 + $0x68] sm:$0xff] }
  0x43   : > { %v792_v6 = vld [vmem:[%s4187_s4 + $0x60] sm:$0xff]  ;;  %v779_v7 = vld [vmem:[%s4186_s3 + $0x78] sm:$0xff]  ;;  %v778_v8 = vld [vmem:[%s4186_s3 + $0x70] sm:$0xff] }
  0x44   : > { %547 = vperm.xlu1 %2698, %v485_v26   ;;  %542 = vperm.xlu0 %2697, %v484_v27   ;;  %v795_v9 = vld [vmem:[%s4187_s4 + $0x78] sm:$0xff]  ;;  %v794_v10 = vld [vmem:[%s4187_s4 + $0x70] sm:$0xff]  ;;  %v1245_v11 = vld [vmem:[%s4189_s6 + $0x8] sm:$0xff] }
  0x45   : > { %2406 = vmatmul.mubr.msk.f32.gmra.mrb[4].mxu0 %vm570_vm0, %v463_v28  ;;  %v1244_v12 = vld [vmem:[%s4189_s6] sm:$0xff]  ;;  %v1247_v13 = vld [vmem:[%s4189_s6 + $0x18] sm:$0xff]  ;;  %v1246_v14 = vld [vmem:[%s4189_s6 + $0x10] sm:$0xff] }
  0x46   : > { %2408 = vmatprep.mubr.msk.f32.mxu0 %vm570_vm0, %v464_v29  ;;  %v1249_v15 = vld [vmem:[%s4189_s6 + $0x28] sm:$0xff]  ;;  %v1248_v16 = vld [vmem:[%s4189_s6 + $0x20] sm:$0xff]  ;;  %v1251_v17 = vld [vmem:[%s4189_s6 + $0x38] sm:$0xff] }
  0x47   : > { %v1250_v18 = vld [vmem:[%s4189_s6 + $0x30] sm:$0xff]  ;;  %v1253_v19 = vld [vmem:[%s4189_s6 + $0x48] sm:$0xff]  ;;  %v1252_v20 = vld [vmem:[%s4189_s6 + $0x40] sm:$0xff] }
  0x48   : > { %557 = vperm.xlu1 %2698, %v487_v30   ;;  %552 = vperm.xlu0 %2697, %v486_v31   ;;  %v1255_v21 = vld [vmem:[%s4189_s6 + $0x58] sm:$0xff]  ;;  %v1254_v22 = vld [vmem:[%s4189_s6 + $0x50] sm:$0xff]  ;;  %v1257_v23 = vld [vmem:[%s4189_s6 + $0x68] sm:$0xff] }
  0x49   : > { %2409 = vmatmul.mubr.msk.f32.gmra.mrb[6].mxu0 %vm570_vm0, %v465_v32  ;;  %v1256_v24 = vld [vmem:[%s4189_s6 + $0x60] sm:$0xff]  ;;  %v1259_v25 = vld [vmem:[%s4189_s6 + $0x78] sm:$0xff]  ;;  %v1258_v26 = vld [vmem:[%s4189_s6 + $0x70] sm:$0xff] }
  0x4a   : > { %2411 = vmatprep.mubr.msk.f32.mxu0 %vm570_vm0, %v466_v33  ;;  %v1486_v27 = vld [vmem:[%s4190_s7 + $0x8] sm:$0xff]  ;;  %v1485_v28 = vld [vmem:[%s4190_s7] sm:$0xff]  ;;  %v1487_v29 = vld [vmem:[%s4190_s7 + $0x10] sm:$0xff] }
  0x4b   : > { %v1501_v30 = vld [vmem:[%s4191_s8] sm:$0xff]  ;;  %v1488_v31 = vld [vmem:[%s4190_s7 + $0x18] sm:$0xff]  ;;  %v1502_v32 = vld [vmem:[%s4191_s8 + $0x8] sm:$0xff] }
  0x4c   : > { %567 = vperm.xlu1 %2698, %v489_v34   ;;  %562 = vperm.xlu0 %2697, %v488_v35   ;;  %v1489_v33 = vld [vmem:[%s4190_s7 + $0x20] sm:$0xff]  ;;  %v1503_v34 = vld [vmem:[%s4191_s8 + $0x10] sm:$0xff]  ;;  %v1490_v35 = vld [vmem:[%s4190_s7 + $0x28] sm:$0xff] }
  0x4d   : > { %2412 = vmatmul.mubr.msk.f32.gmra.mrb[8].mxu0 %vm570_vm0, %v467_v36  ;;  %v1504_v36 = vld [vmem:[%s4191_s8 + $0x18] sm:$0xff] }
  0x4e   : > { %2414 = vmatprep.mubr.msk.f32.mxu0 %vm570_vm0, %v468_v37  ;;  %v1491_v37 = vld [vmem:[%s4190_s7 + $0x30] sm:$0xff] }
  0x50   : > { %899 = vperm.xlu1 %2698, %v765_v38   ;;  %894 = vperm.xlu0 %2697, %v764_v39   ;;  %v1505_v38 = vld [vmem:[%s4191_s8 + $0x20] sm:$0xff]  ;;  %v1492_v39 = vld [vmem:[%s4190_s7 + $0x38] sm:$0xff] }
  0x51   : > { %2415 = vmatmul.mubr.msk.f32.gmra.mrb[10].mxu0 %vm570_vm0, %v469_v40  ;;  %v1506_v40 = vld [vmem:[%s4191_s8 + $0x28] sm:$0xff] }
  0x52   : > { %2417 = vmatprep.mubr.msk.f32.mxu0 %vm570_vm0, %v470_v41  ;;  %v1493_v41 = vld [vmem:[%s4190_s7 + $0x40] sm:$0xff] }
  0x54   : > { %995 = vperm.xlu1 %2698, %v781_v42   ;;  %990 = vperm.xlu0 %2697, %v780_v43   ;;  %v1507_v42 = vld [vmem:[%s4191_s8 + $0x30] sm:$0xff]  ;;  %v1494_v43 = vld [vmem:[%s4190_s7 + $0x48] sm:$0xff] }
  0x55   : > { %2418 = vmatmul.mubr.msk.f32.gmra.mrb[12].mxu0 %vm570_vm0, %v471_v44  ;;  %v1508_v44 = vld [vmem:[%s4191_s8 + $0x38] sm:$0xff] }
  0x56   : > { %2420 = vmatprep.mubr.msk.f32.mxu0 %vm570_vm0, %v472_v45  ;;  %v1495_v45 = vld [vmem:[%s4190_s7 + $0x50] sm:$0xff] }
  0x58   : > { %909 = vperm.xlu1 %2698, %v767_v46   ;;  %904 = vperm.xlu0 %2697, %v766_v47   ;;  %v1509_v46 = vld [vmem:[%s4191_s8 + $0x40] sm:$0xff]  ;;  %v1496_v47 = vld [vmem:[%s4190_s7 + $0x58] sm:$0xff] }
  0x59   : > { %2421 = vmatmul.mubr.msk.f32.gmra.mrb[14].mxu0 %vm570_vm0, %v473_v48  ;;  %v1510_v48 = vld [vmem:[%s4191_s8 + $0x48] sm:$0xff] }
  0x5c   : > { %1005 = vperm.xlu1 %2698, %v783_v49   ;;  %1000 = vperm.xlu0 %2697, %v782_v50   ;;  %v1497_v50 = vld [vmem:[%s4190_s7 + $0x60] sm:$0xff] }
  0x60   : > { %919 = vperm.xlu1 %2698, %v769_v51   ;;  %914 = vperm.xlu0 %2697, %v768_v52   ;;  %v1511_v51 = vld [vmem:[%s4191_s8 + $0x50] sm:$0xff] }
  0x64   : > { %1015 = vperm.xlu1 %2698, %v785_v53   ;;  %1010 = vperm.xlu0 %2697, %v784_v54   ;;  %v1498_v53 = vld [vmem:[%s4190_s7 + $0x68] sm:$0xff]  ;;  %v1512_v54 = vld [vmem:[%s4191_s8 + $0x58] sm:$0xff] }
  0x68   : > { %929 = vperm.xlu1 %2698, %v771_v55   ;;  %924 = vperm.xlu0 %2697, %v770_v56   ;;  %v1499_v55 = vld [vmem:[%s4190_s7 + $0x70] sm:$0xff]  ;;  %v1513_v56 = vld [vmem:[%s4191_s8 + $0x60] sm:$0xff] }
  0x6c   : > { %1025 = vperm.xlu1 %2698, %v787_v57   ;;  %1020 = vperm.xlu0 %2697, %v786_v58   ;;  %v1500_v58 = vld [vmem:[%s4190_s7 + $0x78] sm:$0xff] }
  0x70   : > { %939 = vperm.xlu1 %2698, %v773_v59   ;;  %934 = vperm.xlu0 %2697, %v772_v60   ;;  %v1514_v59 = vld [vmem:[%s4191_s8 + $0x68] sm:$0xff] }
  0x74   : > { %1035 = vperm.xlu1 %2698, %v789_v61   ;;  %1030 = vperm.xlu0 %2697, %v788_v62   ;;  %v1516_v61 = vld [vmem:[%s4191_s8 + $0x78] sm:$0xff]  ;;  %v1515_v62 = vld [vmem:[%s4191_s8 + $0x70] sm:$0xff] }
  0x78   : > { %949 = vperm.xlu1 %2698, %v775_v63   ;;  %944 = vperm.xlu0 %2697, %v774_v0  }
  0x7c   : > { %1045 = vperm.xlu1 %2698, %v791_v1   ;;  %1040 = vperm.xlu0 %2697, %v790_v2  }
  0x80   : > { %959 = vperm.xlu1 %2698, %v777_v3   ;;  %954 = vperm.xlu0 %2697, %v776_v4  }
  0x84   : > { %1055 = vperm.xlu1 %2698, %v793_v5   ;;  %1050 = vperm.xlu0 %2697, %v792_v6  }
  0x88   : > { %969 = vperm.xlu1 %2698, %v779_v7   ;;  %964 = vperm.xlu0 %2697, %v778_v8  }
  0x8c   : > { %1065 = vperm.xlu1 %2698, %v795_v9   ;;  %1060 = vperm.xlu0 %2697, %v794_v10  }
  0x90   : > { %1267 = vperm.xlu1 %2698, %v1245_v11   ;;  %1262 = vperm.xlu0 %2697, %v1244_v12  }
  0x94   : > { %1277 = vperm.xlu1 %2698, %v1247_v13   ;;  %1272 = vperm.xlu0 %2697, %v1246_v14  }
  0x98   : > { %1287 = vperm.xlu1 %2698, %v1249_v15   ;;  %1282 = vperm.xlu0 %2697, %v1248_v16  }
  0x9c   : > { %1297 = vperm.xlu1 %2698, %v1251_v17   ;;  %1292 = vperm.xlu0 %2697, %v1250_v18  }
  0xa0   : > { %1307 = vperm.xlu1 %2698, %v1253_v19   ;;  %1302 = vperm.xlu0 %2697, %v1252_v20  }
  0xa4   : > { %1317 = vperm.xlu1 %2698, %v1255_v21   ;;  %1312 = vperm.xlu0 %2697, %v1254_v22  }
  0xa8   : > { %1327 = vperm.xlu1 %2698, %v1257_v23   ;;  %1322 = vperm.xlu0 %2697, %v1256_v24  }
  0xac   : > { %1337 = vperm.xlu1 %2698, %v1259_v25   ;;  %1332 = vperm.xlu0 %2697, %v1258_v26  }
  0xaf   : > { %v493_v49 = vpop.permute.xlu0 %492  ;;  %v503_v0 = vpop.permute.xlu1 %502 }
  0xb0   : > { %1620 = vperm.xlu1 %2698, %v1486_v27   ;;  %1615 = vperm.xlu0 %2697, %v1485_v28  }
  0xb3   : > { %v498_v52 = vpop.permute.xlu0 %497  ;;  %v508_v2 = vpop.permute.xlu1 %507 }
  0xb4   : > { %1625 = vperm.xlu1 %2698, %v1487_v29   ;;  %1711 = vperm.xlu0 %2697, %v1501_v30  }
  0xb7   : > { %v513_v57 = vpop.permute.xlu0 %512  ;;  %v518_v4 = vpop.permute.xlu1 %517 }
  0xb8   : > { %1630 = vperm.xlu1 %2698, %v1488_v31   ;;  %1716 = vperm.xlu0 %2697, %v1502_v32  }
  0xbb   : > { %v523_v60 = vpop.permute.xlu0 %522  ;;  %v528_v6 = vpop.permute.xlu1 %527 }
  0xbc   : > { %1635 = vperm.xlu1 %2698, %v1489_v33   ;;  %1721 = vperm.xlu0 %2697, %v1503_v34  }
  0xbf   : > { %v533_v63 = vpop.permute.xlu0 %532  ;;  %v538_v8 = vpop.permute.xlu1 %537 }
  0xc0   : > { %1640 = vperm.xlu1 %2698, %v1490_v35   ;;  %1726 = vperm.xlu0 %2697, %v1504_v36   ;;  %v1228_v36 = vld [vmem:[%s4188_s5] sm:$0xff] }
  0xc1   : > { %2455 = vmatprep.mubr.f32.mxu1 %v1228_v36 }
  0xc3   : > { %v3368_v1 = vpop.permute.xlu0 %542  ;;  %v548_v10 = vpop.permute.xlu1 %547 }
  0xc4   : > { %1645 = vperm.xlu1 %2698, %v1491_v37   ;;  %1731 = vperm.xlu0 %2697, %v1505_v38  }
  0xc7   : > { %v3370_v3 = vpop.permute.xlu0 %552  ;;  %v558_v17 = vpop.permute.xlu1 %557 }
  0xc8   : > { %1650 = vperm.xlu1 %2698, %v1492_v39   ;;  %1736 = vperm.xlu0 %2697, %v1506_v40  }
  0xcb   : > { %v3372_v5 = vpop.permute.xlu0 %562  ;;  %v568_v31 = vpop.permute.xlu1 %567 }
  0xcc   : > { %1655 = vperm.xlu1 %2698, %v1493_v41   ;;  %1741 = vperm.xlu0 %2697, %v1507_v42  }
  0xcf   : > { %v3374_v7 = vpop.permute.xlu0 %894 }
  0xd0   : > { %1660 = vperm.xlu1 %2698, %v1494_v43   ;;  %1746 = vperm.xlu0 %2697, %v1508_v44  }
  0xd3   : > { %v3376_v9 = vpop.permute.xlu0 %990 }
  0xd4   : > { %1665 = vperm.xlu1 %2698, %v1495_v45   ;;  %1751 = vperm.xlu0 %2697, %v1509_v46  }
  0xd7   : > { %v3380_v14 = vpop.permute.xlu0 %904 }
  0xd8   : > { %1670 = vperm.xlu1 %2698, %v1496_v47   ;;  %1756 = vperm.xlu0 %2697, %v1510_v48   ;;  %v3421_v48 = vpop.permute.xlu1 %899 }
  0xdb   : > { %v3394_v25 = vpop.permute.xlu0 %1000 }
  0xdc   : > { %1675 = vperm.xlu1 %2698, %v1497_v50   ;;  %1761 = vperm.xlu0 %2697, %v1511_v51  }
  0xdf   : > { %v3414_v43 = vpop.permute.xlu0 %914 }
  0xe0   : > { %1680 = vperm.xlu1 %2698, %v1498_v53   ;;  %1766 = vperm.xlu0 %2697, %v1512_v54  }
  0xe4   : > { %1685 = vperm.xlu1 %2698, %v1499_v55   ;;  %1771 = vperm.xlu0 %2697, %v1513_v56  }
  0xe8   : > { %1690 = vperm.xlu1 %2698, %v1500_v58   ;;  %1776 = vperm.xlu0 %2697, %v1514_v59   ;;  %v3433_v59 = vpop.permute.xlu0 %1010 }
  0xec   : > { %1786 = vperm.xlu1 %2698, %v1516_v61   ;;  %1781 = vperm.xlu0 %2697, %v1515_v62  }
 0x110   : > { %v2401_v11 = vpop.f32.mrb[0].mxu0 }
 0x111   : > { %v3378_v12 = vadd.f32 %v2401_v11, %v498_v52  ;;  %v685_v13 = vpop.f32.mrb[1].mxu0 }
 0x112   : > { %v3382_v15 = vadd.f32 %v685_v13, %v493_v49 }
 0x113   : > { %v818_v16 = vmul.f32 %v3378_v12, %v3378_v12 }
 0x114   : > { %v796_v18 = vadd.f32 %v3378_v12, %v3382_v15  ;;  %v817_v19 = vmul.f32 %v3382_v15, %v3382_v15  ;;  %v2404_v20 = vpop.f32.mrb[2].mxu0 }
 0x115   : > { %v695_v21 = vpop.f32.mrb[3].mxu0  ;;  %v3390_v23 = vadd.f32 %v2404_v20, %v508_v2 }
 0x116   : > { %v833_v22 = vadd.f32 %v818_v16, %v817_v19  ;;  %v3392_v24 = vadd.f32 %v695_v21, %v503_v0 }
 0x117   : > { %v820_v32 = vmul.f32 %v3390_v23, %v3390_v23 }
 0x118   : > { %v797_v26 = vadd.f32 %v796_v18, %v3392_v24  ;;  %v819_v27 = vmul.f32 %v3392_v24, %v3392_v24  ;;  %v2407_v28 = vpop.f32.mrb[4].mxu0 }
 0x119   : > { %v3399_v29 = vadd.f32 %v2407_v28, %v518_v4  ;;  %v705_v30 = vpop.f32.mrb[5].mxu0 }
 0x11a   : > { %v834_v33 = vadd.f32 %v833_v22, %v819_v27  ;;  %v3403_v34 = vadd.f32 %v705_v30, %v513_v57  ;;  %v798_v35 = vadd.f32 %v797_v26, %v3390_v23  ;;  %v3453_v26 = vpop.permute.xlu0 %924 }
 0x11b   : > { %v822_v41 = vmul.f32 %v3399_v29, %v3399_v29 }
 0x11c   : > { %v799_v37 = vadd.f32 %v798_v35, %v3403_v34  ;;  %v821_v38 = vmul.f32 %v3403_v34, %v3403_v34  ;;  %v835_v39 = vadd.f32 %v834_v33, %v820_v32  ;;  %v2410_v40 = vpop.f32.mrb[6].mxu0 }
 0x11d   : > { %v715_v42 = vpop.f32.mrb[7].mxu0  ;;  %v3416_v45 = vadd.f32 %v2410_v40, %v528_v6  ;;  %v3440_v6 = vpop.permute.xlu1 %995 }
 0x11e   : > { %v836_v44 = vadd.f32 %v835_v39, %v821_v38  ;;  %v3418_v46 = vadd.f32 %v715_v42, %v523_v60  ;;  %v800_v47 = vadd.f32 %v799_v37, %v3399_v29 }
 0x11f   : > { %v824_v55 = vmul.f32 %v3416_v45, %v3416_v45 }
 0x120   : > { %v801_v49 = vadd.f32 %v800_v47, %v3418_v46  ;;  %v823_v50 = vmul.f32 %v3418_v46, %v3418_v46  ;;  %v837_v51 = vadd.f32 %v836_v44, %v822_v41  ;;  %v2413_v52 = vpop.f32.mrb[8].mxu0  ;;  %v3472_v41 = vpop.permute.xlu0 %1020 }
 0x121   : > { %v3426_v53 = vadd.f32 %v2413_v52, %v538_v8  ;;  %v725_v54 = vpop.f32.mrb[9].mxu0  ;;  %v3461_v30 = vpop.permute.xlu1 %909 }
 0x122   : > { %v838_v56 = vadd.f32 %v837_v51, %v823_v50  ;;  %v3430_v57 = vadd.f32 %v725_v54, %v533_v63  ;;  %v802_v58 = vadd.f32 %v801_v49, %v3416_v45 }
 0x123   : > { %v826_v2 = vmul.f32 %v3426_v53, %v3426_v53 }
 0x124   : > { %v803_v60 = vadd.f32 %v802_v58, %v3430_v57  ;;  %v825_v61 = vmul.f32 %v3430_v57, %v3430_v57  ;;  %v839_v62 = vadd.f32 %v838_v56, %v824_v55  ;;  %v2416_v0 = vpop.f32.mrb[10].mxu0  ;;  %v3479_v55 = vpop.permute.xlu0 %934 }
 0x125   : > { %v735_v4 = vpop.f32.mrb[11].mxu0  ;;  %v3442_v63 = vadd.f32 %v2416_v0, %v548_v10  ;;  %v3474_v49 = vpop.permute.xlu1 %1005 }
 0x126   : > { %v840_v8 = vadd.f32 %v839_v62, %v825_v61  ;;  %v3445_v11 = vadd.f32 %v735_v4, %v3368_v1  ;;  %v804_v13 = vadd.f32 %v803_v60, %v3426_v53 }
 0x127   : > { %v828_v10 = vmul.f32 %v3442_v63, %v3442_v63 }
 0x128   : > { %v805_v16 = vadd.f32 %v804_v13, %v3445_v11  ;;  %v827_v18 = vmul.f32 %v3445_v11, %v3445_v11  ;;  %v841_v19 = vadd.f32 %v840_v8, %v826_v2  ;;  %v2419_v20 = vpop.f32.mrb[12].mxu0  ;;  %v3481_v2 = vpop.permute.xlu0 %1030 }
 0x129   : > { %v3451_v21 = vadd.f32 %v2419_v20, %v558_v17  ;;  %v745_v22 = vpop.f32.mrb[13].mxu0  ;;  %v920_v58 = vpop.permute.xlu1 %919 }
 0x12a   : > { %v842_v27 = vadd.f32 %v841_v19, %v827_v18  ;;  %v3458_v1 = vadd.f32 %v745_v22, %v3370_v3  ;;  %v806_v28 = vadd.f32 %v805_v16, %v3442_v63 }
 0x12b   : > { %v830_v36 = vmul.f32 %v3451_v21, %v3451_v21 }
 0x12c   : > { %v807_v32 = vadd.f32 %v806_v28, %v3458_v1  ;;  %v829_v17 = vmul.f32 %v3458_v1, %v3458_v1  ;;  %v843_v33 = vadd.f32 %v842_v27, %v828_v10  ;;  %v2422_v35 = vpop.f32.mrb[14].mxu0  ;;  %v3485_v22 = vpop.permute.xlu0 %944 }
 0x12d   : > { %v755_v37 = vpop.f32.mrb[15].mxu0  ;;  %v3468_v39 = vadd.f32 %v2422_v35, %v568_v31  ;;  %v1016_v13 = vpop.permute.xlu1 %1015 }
 0x12e   : > { %v844_v38 = vadd.f32 %v843_v33, %v829_v17  ;;  %v756_v3 = vadd.f32 %v755_v37, %v3372_v5  ;;  %v808_v40 = vadd.f32 %v807_v32, %v3451_v21 }
 0x12f   : > { %v832_v50 = vmul.f32 %v3468_v39, %v3468_v39 }
 0x130   : > { %v809_v42 = vadd.f32 %v808_v40, %v756_v3  ;;  %v831_v44 = vmul.f32 %v756_v3, %v756_v3  ;;  %v845_v47 = vadd.f32 %v844_v38, %v830_v36 }
 0x131   : > { %v930_v37 = vpop.permute.xlu1 %929 }
 0x132   : > { %v810_v51 = vadd.f32 %v809_v42, %v3468_v39  ;;  %v846_v52 = vadd.f32 %v845_v47, %v831_v44  ;;  %v3520_v44 = vpop.permute.xlu0 %1040 }
 0x134   : > { %v811_v54 = vrot.slane %v810_v51, 4  ;;  %v847_v31 = vadd.f32 %v846_v52, %v832_v50 }
 0x135   : > { %v1026_v47 = vpop.permute.xlu1 %1025 }
 0x136   : > { %v812_v5 = vadd.f32 %v811_v54, %v810_v51  ;;  %v848_v56 = vrot.slane %v847_v31, 4  ;;  %v3522_v50 = vpop.permute.xlu0 %954 }
 0x138   : > { %v813_v60 = vrot.slane %v812_v5, 2  ;;  %v849_v61 = vadd.f32 %v848_v56, %v847_v31 }
 0x139   : > { %v3524_v51 = vpop.permute.xlu1 %939 }
 0x13a   : > { %v814_v62 = vadd.f32 %v813_v60, %v812_v5  ;;  %v850_v0 = vrot.slane %v849_v61, 2  ;;  %v3532_v60 = vpop.permute.xlu0 %1050 }
 0x13c   : > { %v815_v4 = vrot.slane %v814_v62, 1  ;;  %v851_v8 = vadd.f32 %v850_v0, %v849_v61 }
 0x13e   : > { %v816_v16 = vadd.f32 %v815_v4, %v814_v62  ;;  %v852_v18 = vrot.slane %v851_v8, 1 }
 0x140   : > { %v853_v19 = vadd.f32 %v852_v18, %v851_v8  ;;  %v3483_v20 = vmul.f32 0.0078125, %v816_v16 }
 0x142   : > { %v855_v10 = vmul.f32 0.0078125, %v853_v19  ;;  %v856_v27 = vmul.f32 %v3483_v20, %v3483_v20  ;;  %v874_v28 = vsub.f32 %v756_v3, %v3483_v20  ;;  %v860_v32 = vsub.f32 %v3382_v15, %v3483_v20  ;;  %v3541_v19 = vpop.permute.xlu1 %1035 }
 0x143   : > { %v861_v17 = vsub.f32 %v3378_v12, %v3483_v20  ;;  %v862_v33 = vsub.f32 %v3392_v24, %v3483_v20  ;;  %v863_v35 = vsub.f32 %v3390_v23, %v3483_v20  ;;  %v864_v36 = vsub.f32 %v3403_v34, %v3483_v20 }
 0x144   : > { %v857_v38 = vsub.f32 %v855_v10, %v856_v27  ;;  %v865_v3 = vsub.f32 %v3399_v29, %v3483_v20  ;;  %v866_v15 = vsub.f32 %v3418_v46, %v3483_v20  ;;  %v867_v12 = vsub.f32 %v3416_v45, %v3483_v20 }
 0x145   : > { %v868_v24 = vsub.f32 %v3430_v57, %v3483_v20  ;;  %v869_v23 = vsub.f32 %v3426_v53, %v3483_v20  ;;  %v870_v34 = vsub.f32 %v3445_v11, %v3483_v20  ;;  %v871_v40 = vsub.f32 %v3442_v63, %v3483_v20 }
 0x146   : > { %v858_v42 = vadd.f32 1e-05, %v857_v38  ;;  %v872_v29 = vsub.f32 %v3458_v1, %v3483_v20  ;;  %v873_v46 = vsub.f32 %v3451_v21, %v3483_v20  ;;  %v875_v45 = vsub.f32 %v3468_v39, %v3483_v20 }
 0x148   : > { %2699 = vrsqrt.f32 %v858_v42 }
 0x152   : > { %v3526_v52 = vpop.eup %2699 }
 0x153   : > { %v890_v54 = vmul.f32 %v3526_v52, %v874_v28  ;;  %v876_v31 = vmul.f32 %v3526_v52, %v860_v32  ;;  %v877_v5 = vmul.f32 %v3526_v52, %v861_v17  ;;  %v878_v56 = vmul.f32 %v3526_v52, %v862_v33 }
 0x154   : > { %v879_v61 = vmul.f32 %v3526_v52, %v863_v35  ;;  %v880_v62 = vmul.f32 %v3526_v52, %v864_v36  ;;  %v881_v0 = vmul.f32 %v3526_v52, %v865_v3  ;;  %v882_v4 = vmul.f32 %v3526_v52, %v866_v15 }
 0x155   : > { %v972_v8 = vmul.f32 %v3374_v7, %v876_v31  ;;  %v973_v16 = vmul.f32 %v3421_v48, %v877_v5  ;;  %v974_v18 = vmul.f32 %v3380_v14, %v878_v56  ;;  %v883_v32 = vmul.f32 %v3526_v52, %v867_v12 }
 0x156   : > { %v975_v10 = vmul.f32 %v3461_v30, %v879_v61  ;;  %v976_v27 = vmul.f32 %v3414_v43, %v880_v62  ;;  %v977_v28 = vmul.f32 %v920_v58, %v881_v0  ;;  %v965_v58 = vpop.permute.xlu0 %964  ;;  %v978_v3 = vmul.f32 %v3453_v26, %v882_v4 }
 0x157   : > { %v1068_v17 = vadd.f32 %v3376_v9, %v972_v8  ;;  %v1069_v33 = vadd.f32 %v3440_v6, %v973_v16  ;;  %v3549_v35 = vadd.f32 %v3394_v25, %v974_v18  ;;  %v3561_v38 = vmul.f32 %v965_v58, %v890_v54 }
 0x158   : > { %v3552_v7 = vadd.f32 %v3474_v49, %v975_v10  ;;  %v3555_v14 = vadd.f32 %v3433_v59, %v976_v27  ;;  %v3557_v48 = vadd.f32 %v1016_v13, %v977_v28  ;;  %v950_v49 = vpop.permute.xlu1 %949  ;;  %v979_v56 = vmul.f32 %v930_v37, %v883_v32 }
 0x159   : > { %v1100_v30 = vmul.f32 0.044715, %v1068_v17  ;;  %v1101_v43 = vmul.f32 0.044715, %v1069_v33  ;;  %v1102_v36 = vmul.f32 0.044715, %v3549_v35  ;;  %v3575_v8 = vadd.f32 %v3472_v41, %v978_v3 }
 0x15a   : > { %v1103_v9 = vmul.f32 0.044715, %v3552_v7  ;;  %v1104_v13 = vmul.f32 0.044715, %v3555_v14  ;;  %v1105_v12 = vmul.f32 0.044715, %v3557_v48  ;;  %v3577_v16 = vadd.f32 %v1026_v47, %v979_v56 }
 0x15b   : > { %v1116_v6 = vmul.f32 %v1100_v30, %v1068_v17  ;;  %v1117_v25 = vmul.f32 %v1101_v43, %v1069_v33  ;;  %v1118_v15 = vmul.f32 %v1102_v36, %v3549_v35  ;;  %v3568_v42 = vmul.f32 0.5, %v1068_v17 }
 0x15c   : > { %v1119_v59 = vmul.f32 %v1103_v9, %v3552_v7  ;;  %v1120_v26 = vmul.f32 %v1104_v13, %v3555_v14  ;;  %v1121_v62 = vmul.f32 %v1105_v12, %v3557_v48  ;;  %v3583_v28 = vmul.f32 0.5, %v1069_v33 }
 0x15d   : > { %v1132_v31 = vmul.f32 %v1116_v6, %v1068_v17  ;;  %v1133_v5 = vmul.f32 %v1117_v25, %v1069_v33  ;;  %v1134_v54 = vmul.f32 %v1118_v15, %v3549_v35  ;;  %v884_v41 = vmul.f32 %v3526_v52, %v868_v24 }
 0x15e   : > { %v1135_v61 = vmul.f32 %v1119_v59, %v3552_v7  ;;  %v1136_v37 = vmul.f32 %v1120_v26, %v3555_v14  ;;  %v1137_v27 = vmul.f32 %v1121_v62, %v3557_v48  ;;  %v1106_v9 = vmul.f32 0.044715, %v3575_v8 }
 0x15f   : > { %v1148_v0 = vadd.f32 %v1132_v31, %v1068_v17  ;;  %v1149_v4 = vadd.f32 %v1133_v5, %v1069_v33  ;;  %v1150_v18 = vadd.f32 %v1134_v54, %v3549_v35  ;;  %v1046_v17 = vpop.permute.xlu1 %1045  ;;  %v1107_v33 = vmul.f32 0.044715, %v3577_v16 }
 0x160   : > { %v1151_v10 = vadd.f32 %v1135_v61, %v3552_v7  ;;  %v1152_v58 = vadd.f32 %v1136_v37, %v3555_v14  ;;  %v1153_v36 = vadd.f32 %v1137_v27, %v3557_v48  ;;  %v885_v6 = vmul.f32 %v3526_v52, %v869_v23 }
 0x161   : > { %v1164_v32 = vmul.f32 0.7978846, %v1148_v0  ;;  %v1165_v30 = vmul.f32 0.7978846, %v1149_v4  ;;  %v1166_v47 = vmul.f32 0.7978846, %v1150_v18  ;;  %v980_v25 = vmul.f32 %v3479_v55, %v884_v41 }
 0x162   : > { %v1167_v43 = vmul.f32 0.7978846, %v1151_v10  ;;  %v1168_v57 = vmul.f32 0.7978846, %v1152_v58  ;;  %v1169_v24 = vmul.f32 0.7978846, %v1153_v36  ;;  %v1122_v3 = vmul.f32 %v1106_v9, %v3575_v8 }
 0x163   : > { %2701 = vtanh.f32 %v1164_v32  ;;  %v1123_v15 = vmul.f32 %v1107_v33, %v3577_v16  ;;  %v981_v59 = vmul.f32 %v3524_v51, %v885_v6  ;;  %v3602_v13 = vadd.f32 %v3481_v2, %v980_v25  ;;  %v960_v2 = vpop.permute.xlu1 %959 }
 0x164   : > { %2703 = vtanh.f32 %v1165_v30  ;;  %v886_v53 = vmul.f32 %v3526_v52, %v870_v34  ;;  %v887_v55 = vmul.f32 %v3526_v52, %v871_v40  ;;  %v1138_v23 = vmul.f32 %v1122_v3, %v3575_v8 }
 0x165   : > { %2705 = vtanh.f32 %v1166_v47  ;;  %v1139_v12 = vmul.f32 %v1123_v15, %v3577_v16  ;;  %v3615_v51 = vadd.f32 %v3541_v19, %v981_v59  ;;  %v1086_v31 = vmul.f32 0.5, %v3549_v35 }
 0x166   : > { %2707 = vtanh.f32 %v1167_v43  ;;  %v1108_v11 = vmul.f32 0.044715, %v3602_v13  ;;  %v982_v34 = vmul.f32 %v3485_v22, %v886_v53  ;;  %v1087_v63 = vmul.f32 0.5, %v3552_v7 }
 0x167   : > { %2709 = vtanh.f32 %v1168_v57  ;;  %v1154_v40 = vadd.f32 %v1138_v23, %v3575_v8  ;;  %v1155_v5 = vadd.f32 %v1139_v12, %v3577_v16  ;;  %v1109_v56 = vmul.f32 0.044715, %v3615_v51  ;;  %v1056_v21 = vpop.permute.xlu1 %1055 }
 0x168   : > { %2711 = vtanh.f32 %v1169_v24  ;;  %v1124_v54 = vmul.f32 %v1108_v11, %v3602_v13  ;;  %v983_v19 = vmul.f32 %v950_v49, %v887_v55  ;;  %v3626_v61 = vadd.f32 %v3520_v44, %v982_v34 }
 0x169   : > { %v888_v35 = vmul.f32 %v3526_v52, %v872_v29  ;;  %v1170_v22 = vmul.f32 0.7978846, %v1154_v40  ;;  %v1171_v26 = vmul.f32 0.7978846, %v1155_v5  ;;  %v1125_v7 = vmul.f32 %v1109_v56, %v3615_v51 }
 0x16a   : > { %v889_v62 = vmul.f32 %v3526_v52, %v873_v46  ;;  %v1088_v0 = vmul.f32 0.5, %v3555_v14  ;;  %v1140_v49 = vmul.f32 %v1124_v54, %v3602_v13  ;;  %v3639_v44 = vadd.f32 %v1046_v17, %v983_v19 }
 0x16b   : > { %v1110_v4 = vmul.f32 0.044715, %v3626_v61  ;;  %v1089_v29 = vmul.f32 0.5, %v3557_v48  ;;  %2713 = vtanh.f32 %v1170_v22  ;;  %v1141_v18 = vmul.f32 %v1125_v7, %v3615_v51  ;;  %v970_v23 = vpop.permute.xlu1 %969 }
 0x16c   : > { %v984_v10 = vmul.f32 %v3522_v50, %v888_v35  ;;  %2715 = vtanh.f32 %v1171_v26  ;;  %v1156_v46 = vadd.f32 %v1140_v49, %v3602_v13  ;;  %v985_v14 = vmul.f32 %v960_v2, %v889_v62 }
 0x16d   : > { %v2702_v1 = vpop.eup %2701  ;;  %v1157_v41 = vadd.f32 %v1141_v18, %v3615_v51  ;;  %v1111_v17 = vmul.f32 0.044715, %v3639_v44  ;;  %v1126_v48 = vmul.f32 %v1110_v4, %v3626_v61  ;;  %v1091_v26 = vmul.f32 0.5, %v3577_v16 }
 0x16e   : > { %v2704_v37 = vpop.eup %2703  ;;  %v1196_v27 = vadd.f32 1.0, %v2702_v1  ;;  %v1172_v50 = vmul.f32 0.7978846, %v1156_v46  ;;  %v3651_v36 = vadd.f32 %v3532_v60, %v984_v10  ;;  %v1061_v60 = vpop.permute.xlu0 %1060  ;;  %v3658_v11 = vadd.f32 %v1056_v21, %v985_v14 }
 0x16f   : > { %v2706_v32 = vpop.eup %2705  ;;  %v1197_v30 = vadd.f32 1.0, %v2704_v37  ;;  %v1173_v57 = vmul.f32 0.7978846, %v1157_v41  ;;  %v1127_v24 = vmul.f32 %v1111_v17, %v3639_v44  ;;  %v1142_v59 = vmul.f32 %v1126_v48, %v3626_v61  ;;  %v1066_v16 = vpop.permute.xlu1 %1065 }
 0x170   : > { %v2708_v47 = vpop.eup %2707  ;;  %v1212_v43 = vmul.f32 %v1196_v27, %v3568_v42  ;;  %v1198_v58 = vadd.f32 1.0, %v2706_v32  ;;  %2717 = vtanh.f32 %v1172_v50  ;;  %v3661_v34 = vadd.f32 %v1061_v60, %v3561_v38 }
 0x171   : > { %v2710_v9 = vpop.eup %2709  ;;  %v1213_v33 = vmul.f32 %v1197_v30, %v3583_v28  ;;  %v1199_v6 = vadd.f32 1.0, %v2708_v47  ;;  %2719 = vtanh.f32 %v1173_v57  ;;  %v1143_v2 = vmul.f32 %v1127_v24, %v3639_v44 }
 0x172   : > { %v2712_v25 = vpop.eup %2711  ;;  %v1214_v3 = vmul.f32 %v1198_v58, %v1086_v31  ;;  %v1200_v15 = vadd.f32 1.0, %v2710_v9  ;;  %v1158_v28 = vadd.f32 %v1142_v59, %v3626_v61  ;;  %v1112_v5 = vmul.f32 0.044715, %v3651_v36 }
 0x173   : > { %v2543_v53 = vpack.c.bf16 %v1213_v33, %v1212_v43  ;;  %v1215_v42 = vmul.f32 %v1199_v6, %v1087_v63  ;;  %v1201_v55 = vadd.f32 1.0, %v2712_v25  ;;  %v1090_v63 = vmul.f32 0.5, %v3575_v8 }
 0x174   : > { %v1216_v12 = vmul.f32 %v1200_v15, %v1088_v0  ;;  %v1159_v56 = vadd.f32 %v1143_v2, %v3639_v44  ;;  %v1174_v54 = vmul.f32 0.7978846, %v1158_v28  ;;  %v1113_v19 = vmul.f32 0.044715, %v3658_v11 }
 0x175   : > { %2544 = vmatprep.subr.bf16.mxu1 %v2543_v53  ;;  %v2547_v31 = vpack.c.bf16 %v1215_v42, %v1214_v3  ;;  %v1217_v40 = vmul.f32 %v1201_v55, %v1089_v29  ;;  %v2714_v35 = vpop.eup %2713  ;;  %v1128_v38 = vmul.f32 %v1112_v5, %v3651_v36  ;;  %v891_v7 = vmul.f32 %v3526_v52, %v875_v45 }
 0x176   : > { %2546 = vmatpush3.bf16.msra.mxu1 %v2543_v53  ;;  %v2716_v62 = vpop.eup %2715  ;;  %v1202_v0 = vadd.f32 1.0, %v2714_v35  ;;  %v1175_v8 = vmul.f32 0.7978846, %v1159_v56  ;;  %2721 = vtanh.f32 %v1174_v54  ;;  %v1129_v49 = vmul.f32 %v1113_v19, %v3658_v11 }
 0x177   : > { %2548 = vmatprep.subr.bf16.mxu1 %v2547_v31  ;;  %v2551_v22 = vpack.c.bf16 %v1217_v40, %v1216_v12  ;;  %v1203_v4 = vadd.f32 1.0, %v2716_v62  ;;  %v1144_v1 = vmul.f32 %v1128_v38, %v3651_v36  ;;  %v987_v29 = vmul.f32 %v970_v23, %v891_v7 }
 0x178   : > { %v1114_v18 = vmul.f32 0.044715, %v3661_v34  ;;  %v1218_v10 = vmul.f32 %v1202_v0, %v1090_v63  ;;  %2723 = vtanh.f32 %v1175_v8  ;;  %v1145_v39 = vmul.f32 %v1129_v49, %v3658_v11  ;;  %v1230_v0 = vld [vmem:[%s4188_s5 + $0x10] sm:$0xff]  ;;  %v1232_v8 = vld [vmem:[%s4188_s5 + $0x20] sm:$0xff]  ;;  %v1233_v49 = vld [vmem:[%s4188_s5 + $0x28] sm:$0xff] }
 0x179   : > { %v1219_v20 = vmul.f32 %v1203_v4, %v1091_v26  ;;  %v1160_v45 = vadd.f32 %v1144_v1, %v3651_v36  ;;  %v1083_v52 = vadd.f32 %v1066_v16, %v987_v29  ;;  %v1092_v27 = vmul.f32 0.5, %v3602_v13  ;;  %v1234_v4 = vld [vmem:[%s4188_s5 + $0x30] sm:$0xff]  ;;  %v1235_v1 = vld [vmem:[%s4188_s5 + $0x38] sm:$0xff]  ;;  %v1236_v29 = vld [vmem:[%s4188_s5 + $0x40] sm:$0xff] }
 0x17a   : > { %2550 = vmatpush3.bf16.msra.mxu1 %v2547_v31  ;;  %v1130_v37 = vmul.f32 %v1114_v18, %v3661_v34  ;;  %v2718_v21 = vpop.eup %2717  ;;  %v1161_v46 = vadd.f32 %v1145_v39, %v3658_v11  ;;  %v1093_v30 = vmul.f32 0.5, %v3615_v51  ;;  %v1094_v25 = vmul.f32 0.5, %v3626_v61  ;;  %v1237_v18 = vld [vmem:[%s4188_s5 + $0x48] sm:$0xff]  ;;  %v1238_v16 = vld [vmem:[%s4188_s5 + $0x50] sm:$0xff]  ;;  %v1240_v39 = vld [vmem:[%s4188_s5 + $0x60] sm:$0xff] }
 0x17b   : > { %2552 = vmatprep.subr.bf16.mxu1 %v2551_v22  ;;  %v2720_v14 = vpop.eup %2719  ;;  %v2555_v32 = vpack.c.bf16 %v1219_v20, %v1218_v10  ;;  %v1204_v41 = vadd.f32 1.0, %v2718_v21  ;;  %v1176_v17 = vmul.f32 0.7978846, %v1160_v45  ;;  %v1115_v43 = vmul.f32 0.044715, %v1083_v52  ;;  %v1239_v10 = vld [vmem:[%s4188_s5 + $0x58] sm:$0xff]  ;;  %v1268_v21 = vpop.permute.xlu1 %1267 }
 0x17c   : > { %v1205_v48 = vadd.f32 1.0, %v2720_v14  ;;  %v1177_v47 = vmul.f32 0.7978846, %v1161_v46  ;;  %v1146_v58 = vmul.f32 %v1130_v37, %v3661_v34  ;;  %v1095_v53 = vmul.f32 0.5, %v3639_v44  ;;  %v1241_v20 = vld [vmem:[%s4188_s5 + $0x68] sm:$0xff]  ;;  %v1242_v45 = vld [vmem:[%s4188_s5 + $0x70] sm:$0xff]  ;;  %v1263_v37 = vpop.permute.xlu0 %1262 }
 0x17d   : > { %v1220_v50 = vmul.f32 %v1204_v41, %v1092_v27  ;;  %2725 = vtanh.f32 %v1176_v17  ;;  %v1131_v13 = vmul.f32 %v1115_v43, %v1083_v52  ;;  %v1096_v31 = vmul.f32 0.5, %v3651_v36 }
 0x17e   : > { %2554 = vmatpush3.bf16.msra.mxu1 %v2551_v22  ;;  %v1221_v9 = vmul.f32 %v1205_v48, %v1093_v30  ;;  %2727 = vtanh.f32 %v1177_v47  ;;  %v1162_v33 = vadd.f32 %v1146_v58, %v3661_v34  ;;  %v1097_v61 = vmul.f32 0.5, %v3658_v11  ;;  %v1229_v11 = vld [vmem:[%s4188_s5 + $0x8] sm:$0xff] }
 0x17f   : > { %2556 = vmatprep.subr.bf16.mxu1 %v2555_v32  ;;  %v1147_v51 = vmul.f32 %v1131_v13, %v1083_v52  ;;  %v1098_v35 = vmul.f32 0.5, %v3661_v34  ;;  %v1099_v26 = vmul.f32 0.5, %v1083_v52  ;;  %v1231_v34 = vld [vmem:[%s4188_s5 + $0x18] sm:$0xff]  ;;  %v1278_v46 = vpop.permute.xlu1 %1277 }
 0x180   : > { %v2722_v6 = vpop.eup %2721  ;;  %v2559_v57 = vpack.c.bf16 %v1221_v9, %v1220_v50  ;;  %v1178_v24 = vmul.f32 0.7978846, %v1162_v33  ;;  %v1273_v27 = vpop.permute.xlu0 %1272 }
 0x181   : > { %v1206_v3 = vadd.f32 1.0, %v2722_v6  ;;  %v1163_v59 = vadd.f32 %v1147_v51, %v1083_v52  ;;  %v1243_v52 = vld [vmem:[%s4188_s5 + $0x78] sm:$0xff] }
 0x182   : > { %2558 = vmatpush3.bf16.msra.mxu1 %v2555_v32  ;;  %v2724_v15 = vpop.eup %2723  ;;  %2729 = vtanh.f32 %v1178_v24 }
 0x183   : > { %2560 = vmatprep.subr.bf16.mxu1 %v2559_v57  ;;  %v1207_v42 = vadd.f32 1.0, %v2724_v15  ;;  %v1222_v55 = vmul.f32 %v1206_v3, %v1094_v25  ;;  %v1179_v23 = vmul.f32 0.7978846, %v1163_v59  ;;  %v1288_v32 = vpop.permute.xlu1 %1287 }
 0x184   : > { %v1283_v14 = vpop.permute.xlu0 %1282 }
 0x185   : > { %v1223_v60 = vmul.f32 %v1207_v42, %v1095_v53  ;;  %2731 = vtanh.f32 %v1179_v23 }
 0x186   : > { %2562 = vmatpush3.bf16.msra.mxu1 %v2559_v57 }
 0x187   : > { %v2726_v12 = vpop.eup %2725  ;;  %v2563_v2 = vpack.c.bf16 %v1223_v60, %v1222_v55  ;;  %v1298_v41 = vpop.permute.xlu1 %1297 }
 0x188   : > { %v2728_v28 = vpop.eup %2727  ;;  %v1208_v40 = vadd.f32 1.0, %v2726_v12  ;;  %v1293_v30 = vpop.permute.xlu0 %1292 }
 0x189   : > { %2564 = vmatprep.subr.bf16.mxu1 %v2563_v2  ;;  %v1209_v5 = vadd.f32 1.0, %v2728_v28 }
 0x18a   : > { %2566 = vmatpush3.bf16.msra.mxu1 %v2563_v2  ;;  %v1224_v63 = vmul.f32 %v1208_v40, %v1096_v31 }
 0x18b   : > { %v1225_v56 = vmul.f32 %v1209_v5, %v1097_v61  ;;  %v1308_v48 = vpop.permute.xlu1 %1307 }
 0x18c   : > { %v2730_v44 = vpop.eup %2729  ;;  %v1303_v17 = vpop.permute.xlu0 %1302 }
 0x18d   : > { %v2567_v54 = vpack.c.bf16 %v1225_v56, %v1224_v63  ;;  %v1210_v19 = vadd.f32 1.0, %v2730_v44 }
 0x18f   : > { %2568 = vmatprep.subr.bf16.mxu1 %v2567_v54  ;;  %v2732_v22 = vpop.eup %2731  ;;  %v1226_v7 = vmul.f32 %v1210_v19, %v1098_v35  ;;  %v1318_v51 = vpop.permute.xlu1 %1317 }
 0x190   : > { %2570 = vmatpush3.bf16.msra.mxu1 %v2567_v54  ;;  %v1211_v38 = vadd.f32 1.0, %v2732_v22  ;;  %v1313_v47 = vpop.permute.xlu0 %1312 }
 0x192   : > { %v1227_v36 = vmul.f32 %v1211_v38, %v1099_v26 }
 0x193   : > { %v1328_v40 = vpop.permute.xlu1 %1327 }
 0x194   : > { %v2571_v62 = vpack.c.bf16 %v1227_v36, %v1226_v7  ;;  %v1323_v25 = vpop.permute.xlu0 %1322 }
 0x196   : > { %2572 = vmatprep.subr.bf16.mxu1 %v2571_v62 }
 0x197   : > { %2574 = vmatpush3.bf16.msra.mxu1 %v2571_v62 }
 0x198   : > { %v1333_v61 = vpop.permute.xlu0 %1332 }
 0x19a   : > { %2456 = vmatmul.mubr.f32.vlgmr.msra.gmra.mrb[0].mxu1 %v1229_v11 }
 0x19b   : > { %2458 = vmatprep.mubr.f32.mxu1 %v1230_v0  ;;  %v1338_v0 = vpop.permute.xlu1 %1337 }
 0x19e   : > { %2459 = vmatmul.mubr.f32.gmra.mrb[2].mxu1 %v1231_v34 }
 0x19f   : > { %2461 = vmatprep.mubr.f32.mxu1 %v1232_v8 }
 0x1a2   : > { %2462 = vmatmul.mubr.f32.gmra.mrb[4].mxu1 %v1233_v49  ;;  %v3773_v49 = vpop.permute.xlu0 %1615 }
 0x1a3   : > { %2464 = vmatprep.mubr.f32.mxu1 %v1234_v4 }
 0x1a6   : > { %2465 = vmatmul.mubr.f32.gmra.mrb[6].mxu1 %v1235_v1 }
 0x1a7   : > { %2467 = vmatprep.mubr.f32.mxu1 %v1236_v29 }
 0x1aa   : > { %2468 = vmatmul.mubr.f32.gmra.mrb[8].mxu1 %v1237_v18 }
 0x1ab   : > { %2470 = vmatprep.mubr.f32.mxu1 %v1238_v16 }
 0x1ae   : > { %2471 = vmatmul.mubr.f32.gmra.mrb[10].mxu1 %v1239_v10 }
 0x1af   : > { %2473 = vmatprep.mubr.f32.mxu1 %v1240_v39 }
 0x1b2   : > { %2474 = vmatmul.mubr.f32.gmra.mrb[12].mxu1 %v1241_v20 }
 0x1b3   : > { %2476 = vmatprep.mubr.f32.mxu1 %v1242_v45 }
 0x1b6   : > { %2477 = vmatmul.mubr.f32.gmra.mrb[14].mxu1 %v1243_v52 }
 0x26d   : > { %v2457_v43 = vpop.f32.mrb[0].mxu1 }
 0x26e   : > { %v3734_v58 = vadd.f32 %v2457_v43, %v1268_v21  ;;  %v1406_v50 = vpop.f32.mrb[1].mxu1 }
 0x26f   : > { %v3736_v9 = vadd.f32 %v1406_v50, %v1263_v37 }
 0x270   : > { %v1539_v13 = vmul.f32 %v3734_v58, %v3734_v58 }
 0x271   : > { %v1517_v33 = vadd.f32 %v3734_v58, %v3736_v9  ;;  %v1538_v6 = vmul.f32 %v3736_v9, %v3736_v9  ;;  %v2460_v57 = vpop.f32.mrb[2].mxu1 }
 0x272   : > { %v1416_v24 = vpop.f32.mrb[3].mxu1  ;;  %v3744_v15 = vadd.f32 %v2460_v57, %v1278_v46 }
 0x273   : > { %v1554_v3 = vadd.f32 %v1539_v13, %v1538_v6  ;;  %v3746_v59 = vadd.f32 %v1416_v24, %v1273_v27 }
 0x274   : > { %v1541_v12 = vmul.f32 %v3744_v15, %v3744_v15 }
 0x275   : > { %v1518_v53 = vadd.f32 %v1517_v33, %v3746_v59  ;;  %v1540_v42 = vmul.f32 %v3746_v59, %v3746_v59  ;;  %v2463_v55 = vpop.f32.mrb[4].mxu1 }
 0x276   : > { %v3751_v23 = vadd.f32 %v2463_v55, %v1288_v32  ;;  %v1426_v60 = vpop.f32.mrb[5].mxu1  ;;  %v3792_v32 = vpop.permute.xlu0 %1711 }
 0x277   : > { %v1555_v2 = vadd.f32 %v1554_v3, %v1540_v42  ;;  %v3755_v28 = vadd.f32 %v1426_v60, %v1283_v14  ;;  %v1519_v31 = vadd.f32 %v1518_v53, %v3744_v15  ;;  %v3790_v14 = vpop.permute.xlu1 %1620 }
 0x278   : > { %v1543_v54 = vmul.f32 %v3751_v23, %v3751_v23 }
 0x279   : > { %v1520_v5 = vadd.f32 %v1519_v31, %v3755_v28  ;;  %v1542_v63 = vmul.f32 %v3755_v28, %v3755_v28  ;;  %v1556_v56 = vadd.f32 %v1555_v2, %v1541_v12  ;;  %v2466_v44 = vpop.f32.mrb[6].mxu1 }
 0x27a   : > { %v1436_v19 = vpop.f32.mrb[7].mxu1  ;;  %v3763_v22 = vadd.f32 %v2466_v44, %v1298_v41  ;;  %v3811_v60 = vpop.permute.xlu0 %1716 }
 0x27b   : > { %v1557_v35 = vadd.f32 %v1556_v56, %v1542_v63  ;;  %v3765_v26 = vadd.f32 %v1436_v19, %v1293_v30  ;;  %v1521_v38 = vadd.f32 %v1520_v5, %v3751_v23  ;;  %v3809_v55 = vpop.permute.xlu1 %1625  ;;  %v1982_v5 = vld [vmem:[%s4192_s9 + $0x8] sm:$0xff]  ;;  %v1983_v63 = vld [vmem:[%s4192_s9 + $0x10] sm:$0xff] }
 0x27c   : > { %v1545_v4 = vmul.f32 %v3763_v22, %v3763_v22 }
 0x27d   : > { %v1522_v7 = vadd.f32 %v1521_v38, %v3765_v26  ;;  %v1544_v36 = vmul.f32 %v3765_v26, %v3765_v26  ;;  %v1558_v62 = vadd.f32 %v1557_v35, %v1543_v54  ;;  %v2469_v11 = vpop.f32.mrb[8].mxu1  ;;  %v1985_v38 = vld [vmem:[%s4192_s9 + $0x20] sm:$0xff] }
 0x27e   : > { %v3771_v34 = vadd.f32 %v2469_v11, %v1308_v48  ;;  %v1446_v8 = vpop.f32.mrb[9].mxu1 }
 0x27f   : > { %v1559_v1 = vadd.f32 %v1558_v62, %v1544_v36  ;;  %v3777_v29 = vadd.f32 %v1446_v8, %v1303_v17  ;;  %v1523_v18 = vadd.f32 %v1522_v7, %v3763_v22  ;;  %v1986_v7 = vld [vmem:[%s4192_s9 + $0x28] sm:$0xff]  ;;  %v3842_v8 = vpop.permute.xlu1 %1630 }
 0x280   : > { %v1547_v45 = vmul.f32 %v3771_v34, %v3771_v34 }
 0x281   : > { %v1524_v16 = vadd.f32 %v1523_v18, %v3777_v29  ;;  %v1546_v10 = vmul.f32 %v3777_v29, %v3777_v29  ;;  %v1560_v39 = vadd.f32 %v1559_v1, %v1545_v4  ;;  %v2472_v20 = vpop.f32.mrb[10].mxu1  ;;  %v3844_v4 = vpop.permute.xlu0 %1721 }
 0x282   : > { %v1456_v52 = vpop.f32.mrb[11].mxu1  ;;  %v3785_v21 = vadd.f32 %v2472_v20, %v1318_v51 }
 0x283   : > { %v1561_v37 = vadd.f32 %v1560_v39, %v1546_v10  ;;  %v3787_v27 = vadd.f32 %v1456_v52, %v1313_v47  ;;  %v1525_v46 = vadd.f32 %v1524_v16, %v3771_v34  ;;  %v1987_v16 = vld [vmem:[%s4192_s9 + $0x30] sm:$0xff]  ;;  %v1988_v10 = vld [vmem:[%s4192_s9 + $0x38] sm:$0xff] }
 0x284   : > { %v1549_v47 = vmul.f32 %v3785_v21, %v3785_v21 }
 0x285   : > { %v1526_v30 = vadd.f32 %v1525_v46, %v3787_v27  ;;  %v1548_v41 = vmul.f32 %v3787_v27, %v3787_v27  ;;  %v1562_v17 = vadd.f32 %v1561_v37, %v1547_v45  ;;  %v2475_v48 = vpop.f32.mrb[12].mxu1  ;;  %v2587_v45 = vpack.c.bf16 %v1988_v10, %v1987_v16  ;;  %v1989_v46 = vld [vmem:[%s4192_s9 + $0x40] sm:$0xff] }
 0x286   : > { %v3797_v43 = vadd.f32 %v2475_v48, %v1328_v40  ;;  %v1466_v50 = vpop.f32.mrb[13].mxu1  ;;  %v1981_v40 = vld [vmem:[%s4192_s9] sm:$0xff] }
 0x287   : > { %v1563_v13 = vadd.f32 %v1562_v17, %v1548_v41  ;;  %v3801_v33 = vadd.f32 %v1466_v50, %v1323_v25  ;;  %v1527_v6 = vadd.f32 %v1526_v30, %v3785_v21  ;;  %v2575_v56 = vpack.c.bf16 %v1982_v5, %v1981_v40  ;;  %v1990_v30 = vld [vmem:[%s4192_s9 + $0x48] sm:$0xff]  ;;  %v3858_v41 = vpop.permute.xlu1 %1635  ;;  %v3860_v17 = vpop.permute.xlu0 %1726 }
 0x288   : > { %v1551_v53 = vmul.f32 %v3797_v43, %v3797_v43 }
 0x289   : > { %v1528_v57 = vadd.f32 %v1527_v6, %v3801_v33  ;;  %v1550_v51 = vmul.f32 %v3801_v33, %v3801_v33  ;;  %v1564_v24 = vadd.f32 %v1563_v13, %v1549_v47  ;;  %v2478_v3 = vpop.f32.mrb[14].mxu1  ;;  %2576 = vmatprep.subr.bf16.mxu0 %v2575_v56  ;;  %2607 = vmatprep.subr.bf16.mxu1 %v2575_v56 }
 0x28a   : > { %v1476_v42 = vpop.f32.mrb[15].mxu1  ;;  %v3813_v25 = vadd.f32 %v2478_v3, %v1338_v0  ;;  %2578 = vmatpush3.bf16.msra.mxu0 %v2575_v56  ;;  %v2583_v0 = vpack.c.bf16 %v1986_v7, %v1985_v38  ;;  %2615 = vmatpush3.bf16.msra.mxu1 %v2575_v56  ;;  %v2591_v47 = vpack.c.bf16 %v1990_v30, %v1989_v46 }
 0x28b   : > { %v1565_v12 = vadd.f32 %v1564_v24, %v1550_v51  ;;  %v3815_v2 = vadd.f32 %v1476_v42, %v1333_v61  ;;  %v1529_v31 = vadd.f32 %v1528_v57, %v3797_v43  ;;  %v1984_v61 = vld [vmem:[%s4192_s9 + $0x18] sm:$0xff]  ;;  %v1991_v57 = vld [vmem:[%s4192_s9 + $0x50] sm:$0xff]  ;;  %v1994_v42 = vld [vmem:[%s4192_s9 + $0x68] sm:$0xff]  ;;  %v3874_v40 = vpop.permute.xlu0 %1731 }
 0x28c   : > { %v2579_v35 = vpack.c.bf16 %v1984_v61, %v1983_v63  ;;  %v1553_v36 = vmul.f32 %v3813_v25, %v3813_v25  ;;  %v1992_v51 = vld [vmem:[%s4192_s9 + $0x58] sm:$0xff] }
 0x28d   : > { %v1530_v44 = vadd.f32 %v1529_v31, %v3815_v2  ;;  %v1552_v54 = vmul.f32 %v3815_v2, %v3815_v2  ;;  %v1566_v19 = vadd.f32 %v1565_v12, %v1551_v53  ;;  %v1993_v53 = vld [vmem:[%s4192_s9 + $0x60] sm:$0xff]  ;;  %v2595_v12 = vpack.c.bf16 %v1992_v51, %v1991_v57  ;;  %v1641_v31 = vpop.permute.xlu1 %1640 }
 0x28e   : > { %2580 = vmatprep.subr.bf16.mxu0 %v2579_v35  ;;  %2608 = vmatprep.subr.bf16.mxu1 %v2579_v35  ;;  %v2599_v56 = vpack.c.bf16 %v1994_v42, %v1993_v53 }
 0x28f   : > { %v1531_v62 = vadd.f32 %v1530_v44, %v3813_v25  ;;  %v1567_v11 = vadd.f32 %v1566_v19, %v1552_v54  ;;  %2582 = vmatpush3.bf16.msra.mxu0 %v2579_v35  ;;  %2616 = vmatpush3.bf16.msra.mxu1 %v2579_v35 }
 0x290   : > { %2584 = vmatprep.subr.bf16.mxu0 %v2583_v0  ;;  %2609 = vmatprep.subr.bf16.mxu1 %v2583_v0 }
 0x291   : > { %v1532_v1 = vrot.slane %v1531_v62, 4  ;;  %v1568_v18 = vadd.f32 %v1567_v11, %v1553_v36 }
 0x293   : > { %v1533_v39 = vadd.f32 %v1532_v1, %v1531_v62  ;;  %v1569_v20 = vrot.slane %v1568_v18, 4  ;;  %2586 = vmatpush3.bf16.msra.mxu0 %v2583_v0  ;;  %2617 = vmatpush3.bf16.msra.mxu1 %v2583_v0  ;;  %v1737_v0 = vpop.permute.xlu0 %1736 }
 0x294   : > { %2588 = vmatprep.subr.bf16.mxu0 %v2587_v45  ;;  %2610 = vmatprep.subr.bf16.mxu1 %v2587_v45 }
 0x295   : > { %v1534_v52 = vrot.slane %v1533_v39, 2  ;;  %v1570_v37 = vadd.f32 %v1569_v20, %v1568_v18 }
 0x297   : > { %v1535_v48 = vadd.f32 %v1534_v52, %v1533_v39  ;;  %v1571_v50 = vrot.slane %v1570_v37, 2  ;;  %2590 = vmatpush3.bf16.msra.mxu0 %v2587_v45  ;;  %2618 = vmatpush3.bf16.msra.mxu1 %v2587_v45  ;;  %v1742_v39 = vpop.permute.xlu0 %1741 }
 0x298   : > { %2592 = vmatprep.subr.bf16.mxu0 %v2591_v47  ;;  %2611 = vmatprep.subr.bf16.mxu1 %v2591_v47 }
 0x299   : > { %v1536_v13 = vrot.slane %v1535_v48, 1  ;;  %v1572_v6 = vadd.f32 %v1571_v50, %v1570_v37 }
 0x29b   : > { %v1537_v24 = vadd.f32 %v1536_v13, %v1535_v48  ;;  %v1573_v3 = vrot.slane %v1572_v6, 1  ;;  %2594 = vmatpush3.bf16.msra.mxu0 %v2591_v47  ;;  %2619 = vmatpush3.bf16.msra.mxu1 %v2591_v47  ;;  %v1747_v52 = vpop.permute.xlu0 %1746 }
 0x29c   : > { %2596 = vmatprep.subr.bf16.mxu0 %v2595_v12  ;;  %2612 = vmatprep.subr.bf16.mxu1 %v2595_v12 }
 0x29d   : > { %v1574_v5 = vadd.f32 %v1573_v3, %v1572_v6  ;;  %v3876_v63 = vmul.f32 0.0078125, %v1537_v24 }
 0x29f   : > { %v1576_v61 = vmul.f32 0.0078125, %v1574_v5  ;;  %v1577_v44 = vmul.f32 %v3876_v63, %v3876_v63  ;;  %v1595_v54 = vsub.f32 %v3815_v2, %v3876_v63  ;;  %v1581_v19 = vsub.f32 %v3736_v9, %v3876_v63  ;;  %2598 = vmatpush3.bf16.msra.mxu0 %v2595_v12  ;;  %2620 = vmatpush3.bf16.msra.mxu1 %v2595_v12 }
 0x2a0   : > { %v1582_v35 = vsub.f32 %v3734_v58, %v3876_v63  ;;  %v1583_v38 = vsub.f32 %v3746_v59, %v3876_v63  ;;  %v1584_v7 = vsub.f32 %v3744_v15, %v3876_v63  ;;  %v1585_v36 = vsub.f32 %v3755_v28, %v3876_v63  ;;  %2600 = vmatprep.subr.bf16.mxu0 %v2599_v56 }
 0x2a1   : > { %v1578_v62 = vsub.f32 %v1576_v61, %v1577_v44  ;;  %v1586_v2 = vsub.f32 %v3751_v23, %v3876_v63  ;;  %v1587_v9 = vsub.f32 %v3765_v26, %v3876_v63  ;;  %v1588_v58 = vsub.f32 %v3763_v22, %v3876_v63  ;;  %v1646_v23 = vpop.permute.xlu1 %1645  ;;  %2613 = vmatprep.subr.bf16.mxu1 %v2599_v56 }
 0x2a2   : > { %v1589_v59 = vsub.f32 %v3777_v29, %v3876_v63  ;;  %v1590_v15 = vsub.f32 %v3771_v34, %v3876_v63  ;;  %v1591_v28 = vsub.f32 %v3787_v27, %v3876_v63  ;;  %v1592_v11 = vsub.f32 %v3785_v21, %v3876_v63 }
 0x2a3   : > { %v1579_v26 = vadd.f32 1e-05, %v1578_v62  ;;  %v1593_v1 = vsub.f32 %v3801_v33, %v3876_v63  ;;  %v1594_v18 = vsub.f32 %v3797_v43, %v3876_v63  ;;  %v1596_v16 = vsub.f32 %v3813_v25, %v3876_v63  ;;  %2602 = vmatpush3.bf16.msra.mxu0 %v2599_v56  ;;  %2621 = vmatpush3.bf16.msra.mxu1 %v2599_v56 }
 0x2a5   : > { %2733 = vrsqrt.f32 %v1579_v26  ;;  %v1651_v10 = vpop.permute.xlu1 %1650 }
 0x2a9   : > { %v3914_v45 = vpop.permute.xlu1 %1655 }
 0x2ad   : > { %v1661_v61 = vpop.permute.xlu1 %1660 }
 0x2af   : > { %v3912_v20 = vpop.eup %2733 }
 0x2b0   : > { %v3917_v37 = vmul.f32 %v3912_v20, %v1595_v54  ;;  %v1597_v46 = vmul.f32 %v3912_v20, %v1581_v19  ;;  %v1598_v30 = vmul.f32 %v3912_v20, %v1582_v35  ;;  %v1599_v48 = vmul.f32 %v3912_v20, %v1583_v38 }
 0x2b1   : > { %v1600_v50 = vmul.f32 %v3912_v20, %v1584_v7  ;;  %v1601_v47 = vmul.f32 %v3912_v20, %v1585_v36  ;;  %v1602_v13 = vmul.f32 %v3912_v20, %v1586_v2  ;;  %v1603_v6 = vmul.f32 %v3912_v20, %v1587_v9  ;;  %v1666_v36 = vpop.permute.xlu1 %1665 }
 0x2b2   : > { %v1693_v57 = vmul.f32 %v3773_v49, %v1597_v46  ;;  %v1694_v51 = vmul.f32 %v3790_v14, %v1598_v30  ;;  %v1695_v24 = vmul.f32 %v3809_v55, %v1599_v48  ;;  %v1752_v49 = vpop.permute.xlu0 %1751  ;;  %v1605_v22 = vmul.f32 %v3912_v20, %v1589_v59 }
 0x2b3   : > { %v1696_v3 = vmul.f32 %v3842_v8, %v1600_v50  ;;  %v1697_v53 = vmul.f32 %v3858_v41, %v1601_v47  ;;  %v1698_v42 = vmul.f32 %v1641_v31, %v1602_v13  ;;  %v1607_v59 = vmul.f32 %v3912_v20, %v1591_v28 }
 0x2b4   : > { %v3932_v12 = vadd.f32 %v3792_v32, %v1693_v57  ;;  %v3935_v5 = vadd.f32 %v3811_v60, %v1694_v51  ;;  %v3938_v56 = vadd.f32 %v3844_v4, %v1695_v24  ;;  %v1699_v32 = vmul.f32 %v1646_v23, %v1603_v6 }
 0x2b5   : > { %v3941_v14 = vadd.f32 %v3860_v17, %v1696_v3  ;;  %v3944_v55 = vadd.f32 %v3874_v40, %v1697_v53  ;;  %v3950_v44 = vadd.f32 %v1737_v0, %v1698_v42  ;;  %v1610_v33 = vmul.f32 %v3912_v20, %v1594_v18 }
 0x2b6   : > { %v1821_v8 = vmul.f32 0.044715, %v3932_v12  ;;  %v1822_v41 = vmul.f32 0.044715, %v3935_v5  ;;  %v1823_v31 = vmul.f32 0.044715, %v3938_v56  ;;  %v3959_v7 = vadd.f32 %v1742_v39, %v1699_v32  ;;  %v1757_v62 = vpop.permute.xlu0 %1756 }
 0x2b7   : > { %v1824_v60 = vmul.f32 0.044715, %v3941_v14  ;;  %v1825_v17 = vmul.f32 0.044715, %v3944_v55  ;;  %v1826_v0 = vmul.f32 0.044715, %v3950_v44  ;;  %v1604_v39 = vmul.f32 %v3912_v20, %v1588_v58  ;;  %v1671_v58 = vpop.permute.xlu1 %1670 }
 0x2b8   : > { %v1837_v4 = vmul.f32 %v1821_v8, %v3932_v12  ;;  %v1838_v54 = vmul.f32 %v1822_v41, %v3935_v5  ;;  %v1839_v40 = vmul.f32 %v1823_v31, %v3938_v56  ;;  %v1827_v47 = vmul.f32 0.044715, %v3959_v7 }
 0x2b9   : > { %v1840_v19 = vmul.f32 %v1824_v60, %v3941_v14  ;;  %v1841_v23 = vmul.f32 %v1825_v17, %v3944_v55  ;;  %v1700_v13 = vmul.f32 %v1651_v10, %v1604_v39  ;;  %v1842_v51 = vmul.f32 %v1826_v0, %v3950_v44 }
 0x2ba   : > { %v1853_v35 = vmul.f32 %v1837_v4, %v3932_v12  ;;  %v1854_v38 = vmul.f32 %v1838_v54, %v3935_v5  ;;  %v1855_v2 = vmul.f32 %v1839_v40, %v3938_v56  ;;  %v1762_v53 = vpop.permute.xlu0 %1761  ;;  %v1606_v10 = vmul.f32 %v3912_v20, %v1590_v15 }
 0x2bb   : > { %v1856_v9 = vmul.f32 %v1840_v19, %v3941_v14  ;;  %v1857_v57 = vmul.f32 %v1841_v23, %v3944_v55  ;;  %v3976_v3 = vadd.f32 %v1747_v52, %v1700_v13  ;;  %v1843_v42 = vmul.f32 %v1827_v47, %v3959_v7  ;;  %v1676_v60 = vpop.permute.xlu1 %1675 }
 0x2bc   : > { %v1869_v26 = vadd.f32 %v1853_v35, %v3932_v12  ;;  %v1870_v46 = vadd.f32 %v1854_v38, %v3935_v5  ;;  %v1871_v30 = vadd.f32 %v1855_v2, %v3938_v56  ;;  %v1701_v52 = vmul.f32 %v3914_v45, %v1605_v22 }
 0x2bd   : > { %v1872_v6 = vadd.f32 %v1856_v9, %v3941_v14  ;;  %v1828_v8 = vmul.f32 0.044715, %v3976_v3  ;;  %v1873_v41 = vadd.f32 %v1857_v57, %v3944_v55  ;;  %v1858_v29 = vmul.f32 %v1842_v51, %v3950_v44 }
 0x2be   : > { %v1885_v48 = vmul.f32 0.7978846, %v1869_v26  ;;  %v1886_v50 = vmul.f32 0.7978846, %v1870_v46  ;;  %v1887_v24 = vmul.f32 0.7978846, %v1871_v30  ;;  %v1702_v32 = vmul.f32 %v1661_v61, %v1606_v10  ;;  %v1767_v28 = vpop.permute.xlu0 %1766 }
 0x2bf   : > { %v1888_v34 = vmul.f32 0.7978846, %v1872_v6  ;;  %v3995_v31 = vadd.f32 %v1752_v49, %v1701_v52  ;;  %v1608_v15 = vmul.f32 %v3912_v20, %v1592_v11  ;;  %v1609_v45 = vmul.f32 %v3912_v20, %v1593_v1  ;;  %v1681_v23 = vpop.permute.xlu1 %1680 }
 0x2c0   : > { %2735 = vtanh.f32 %v1885_v48  ;;  %v1859_v61 = vmul.f32 %v1843_v42, %v3959_v7  ;;  %v1844_v27 = vmul.f32 %v1828_v8, %v3976_v3  ;;  %v1874_v4 = vadd.f32 %v1858_v29, %v3950_v44 }
 0x2c1   : > { %2737 = vtanh.f32 %v1886_v50  ;;  %v4008_v49 = vadd.f32 %v1757_v62, %v1702_v32  ;;  %v1703_v54 = vmul.f32 %v1666_v36, %v1607_v59  ;;  %v1889_v21 = vmul.f32 0.7978846, %v1873_v41 }
 0x2c2   : > { %2739 = vtanh.f32 %v1887_v24  ;;  %v1829_v11 = vmul.f32 0.044715, %v3995_v31  ;;  %v1805_v17 = vmul.f32 0.5, %v3932_v12  ;;  %v1875_v40 = vadd.f32 %v1859_v61, %v3959_v7  ;;  %v1772_v18 = vpop.permute.xlu0 %1771 }
 0x2c3   : > { %2741 = vtanh.f32 %v1888_v34  ;;  %v1860_v19 = vmul.f32 %v1844_v27, %v3976_v3  ;;  %v1830_v36 = vmul.f32 0.044715, %v4008_v49  ;;  %v4019_v62 = vadd.f32 %v1762_v53, %v1703_v54  ;;  %v1686_v53 = vpop.permute.xlu1 %1685 }
 0x2c4   : > { %v1704_v2 = vmul.f32 %v1671_v58, %v1608_v15  ;;  %2743 = vtanh.f32 %v1889_v21  ;;  %v1890_v9 = vmul.f32 0.7978846, %v1874_v4  ;;  %v1845_v43 = vmul.f32 %v1829_v11, %v3995_v31  ;;  %v1996_v58 = vld [vmem:[%s4192_s9 + $0x78] sm:$0xff] }
 0x2c5   : > { %v1806_v46 = vmul.f32 0.5, %v3935_v5  ;;  %v1891_v39 = vmul.f32 0.7978846, %v1875_v40  ;;  %v1876_v30 = vadd.f32 %v1860_v19, %v3976_v3  ;;  %v1846_v48 = vmul.f32 %v1830_v36, %v4008_v49  ;;  %v1995_v5 = vld [vmem:[%s4192_s9 + $0x70] sm:$0xff] }
 0x2c6   : > { %v1831_v50 = vmul.f32 0.044715, %v4019_v62  ;;  %v4026_v47 = vadd.f32 %v1767_v28, %v1704_v2  ;;  %2745 = vtanh.f32 %v1890_v9  ;;  %v1861_v13 = vmul.f32 %v1845_v43, %v3995_v31  ;;  %v1777_v10 = vpop.permute.xlu0 %1776 }
 0x2c7   : > { %v1705_v6 = vmul.f32 %v1676_v60, %v1609_v45  ;;  %v1807_v22 = vmul.f32 0.5, %v3938_v56  ;;  %2747 = vtanh.f32 %v1891_v39  ;;  %v1892_v42 = vmul.f32 0.7978846, %v1876_v30 }
 0x2c8   : > { %v1862_v8 = vmul.f32 %v1846_v48, %v4008_v49  ;;  %v1847_v52 = vmul.f32 %v1831_v50, %v4019_v62  ;;  %v1832_v41 = vmul.f32 0.044715, %v4026_v47  ;;  %v1877_v56 = vadd.f32 %v1861_v13, %v3995_v31 }
 0x2c9   : > { %v4040_v29 = vadd.f32 %v1772_v18, %v1705_v6  ;;  %v1706_v32 = vmul.f32 %v1681_v23, %v1610_v33  ;;  %v1612_v59 = vmul.f32 %v3912_v20, %v1596_v16  ;;  %v2603_v45 = vpack.c.bf16 %v1996_v58, %v1995_v5  ;;  %v1691_v20 = vpop.permute.xlu1 %1690 }
 0x2ca   : > { %v2736_v1 = vpop.eup %2735  ;;  %v1707_v27 = vmul.f32 %v1686_v53, %v3917_v37  ;;  %v1808_v60 = vmul.f32 0.5, %v3941_v14  ;;  %v1878_v28 = vadd.f32 %v1862_v8, %v4008_v49  ;;  %v1863_v4 = vmul.f32 %v1847_v52, %v4019_v62  ;;  %v1782_v37 = vpop.permute.xlu0 %1781 }
 0x2cb   : > { %v2738_v35 = vpop.eup %2737  ;;  %v1917_v38 = vadd.f32 1.0, %v2736_v1  ;;  %v1848_v54 = vmul.f32 %v1832_v41, %v4026_v47  ;;  %2604 = vmatprep.subr.bf16.mxu0 %v2603_v45  ;;  %2749 = vtanh.f32 %v1892_v42  ;;  %v1893_v25 = vmul.f32 0.7978846, %v1877_v56  ;;  %2614 = vmatprep.subr.bf16.mxu1 %v2603_v45 }
 0x2cc   : > { %v1918_v26 = vadd.f32 1.0, %v2738_v35  ;;  %v2740_v12 = vpop.eup %2739  ;;  %v1833_v63 = vmul.f32 0.044715, %v4040_v29  ;;  %v4052_v16 = vadd.f32 %v1777_v10, %v1706_v32  ;;  %2606 = vmatpush3.bf16.msra.mxu0 %v2603_v45  ;;  %2622 = vmatpush3.bf16.msra.mxu1 %v2603_v45  ;;  %v4054_v33 = vadd.f32 %v1782_v37, %v1707_v27 }
 0x2cd   : > { %v1933_v0 = vmul.f32 %v1917_v38, %v1805_v17  ;;  %v1919_v51 = vadd.f32 1.0, %v2740_v12  ;;  %v2742_v24 = vpop.eup %2741  ;;  %v1809_v1 = vmul.f32 0.5, %v3944_v55  ;;  %v1894_v17 = vmul.f32 0.7978846, %v1878_v28  ;;  %v1787_v23 = vpop.permute.xlu1 %1786 }
 0x2ce   : > { %v1934_v57 = vmul.f32 %v1918_v26, %v1806_v46  ;;  %v1920_v15 = vadd.f32 1.0, %v2742_v24  ;;  %v2744_v61 = vpop.eup %2743  ;;  %v1879_v40 = vadd.f32 %v1863_v4, %v4019_v62  ;;  %v1864_v19 = vmul.f32 %v1848_v54, %v4026_v47 }
 0x2cf   : > { %1949 = vxpose.xlu0.b32.start [1/16] %v1933_v0, 128  ;;  %v1935_v34 = vmul.f32 %v1919_v51, %v1807_v22  ;;  %v1921_v11 = vadd.f32 1.0, %v2744_v61  ;;  %2751 = vtanh.f32 %v1893_v25  ;;  %v1849_v38 = vmul.f32 %v1833_v63, %v4040_v29 }
 0x2d0   : > { %v1936_v21 = vmul.f32 %v1920_v15, %v1808_v60  ;;  %v2746_v14 = vpop.eup %2745  ;;  %v1834_v36 = vmul.f32 0.044715, %v4052_v16  ;;  %v1708_v2 = vmul.f32 %v1691_v20, %v1612_v59  ;;  %v1810_v18 = vmul.f32 0.5, %v3950_v44 }
 0x2d1   : > { %v2748_v35 = vpop.eup %2747  ;;  %v1937_v9 = vmul.f32 %v1921_v11, %v1809_v1  ;;  %v1922_v43 = vadd.f32 1.0, %v2746_v14  ;;  %2753 = vtanh.f32 %v1894_v17  ;;  %v1895_v55 = vmul.f32 0.7978846, %v1879_v40 }
 0x2d2   : > { %v1880_v0 = vadd.f32 %v1864_v19, %v4026_v47  ;;  %v1865_v26 = vmul.f32 %v1849_v38, %v4040_v29  ;;  %v1850_v12 = vmul.f32 %v1834_v36, %v4052_v16  ;;  %v1835_v46 = vmul.f32 0.044715, %v4054_v33 }
 0x2d3   : > { %1950 = vxpose.xlu0.b32.cont [2/16] %v1934_v57, 128  ;;  %v4066_v39 = vadd.f32 %v1787_v23, %v1708_v2  ;;  %v1938_v30 = vmul.f32 %v1922_v43, %v1810_v18  ;;  %v1923_v48 = vadd.f32 1.0, %v2748_v35  ;;  %v1811_v13 = vmul.f32 0.5, %v3959_v7 }
 0x2d4   : > { %2755 = vtanh.f32 %v1895_v55  ;;  %v1896_v44 = vmul.f32 0.7978846, %v1880_v0  ;;  %v1881_v6 = vadd.f32 %v1865_v26, %v4040_v29  ;;  %v1866_v57 = vmul.f32 %v1850_v12, %v4052_v16 }
 0x2d5   : > { %v2750_v50 = vpop.eup %2749  ;;  %v1851_v51 = vmul.f32 %v1835_v46, %v4054_v33  ;;  %v1836_v24 = vmul.f32 0.044715, %v4066_v39  ;;  %v1939_v22 = vmul.f32 %v1923_v48, %v1811_v13  ;;  %v1812_v53 = vmul.f32 0.5, %v3976_v3 }
 0x2d6   : > { %v1924_v5 = vadd.f32 1.0, %v2750_v50  ;;  %2757 = vtanh.f32 %v1896_v44  ;;  %v1897_v10 = vmul.f32 0.7978846, %v1881_v6  ;;  %v1882_v7 = vadd.f32 %v1866_v57, %v4052_v16 }
 0x2d7   : > { %1951 = vxpose.xlu0.b32.cont [3/16] %v1935_v34, 128  ;;  %v1867_v42 = vmul.f32 %v1851_v51, %v4054_v33  ;;  %v1852_v8 = vmul.f32 %v1836_v24, %v4066_v39  ;;  %v1813_v32 = vmul.f32 0.5, %v3995_v31  ;;  %v1814_v27 = vmul.f32 0.5, %v4008_v49  ;;  %v2297_v51 = vld [vmem:[%s4193_s10] ss:$0 sm:$0xff] }
 0x2d8   : > { %v1940_v41 = vmul.f32 %v1924_v5, %v1812_v53  ;;  %2759 = vtanh.f32 %v1897_v10  ;;  %v1898_v59 = vmul.f32 0.7978846, %v1882_v7  ;;  %v1815_v31 = vmul.f32 0.5, %v4019_v62 }
 0x2d9   : > { %v2752_v58 = vpop.eup %2751  ;;  %v1883_v34 = vadd.f32 %v1867_v42, %v4054_v33  ;;  %v1868_v3 = vmul.f32 %v1852_v8, %v4066_v39  ;;  %v1816_v11 = vmul.f32 0.5, %v4026_v47  ;;  %v1817_v17 = vmul.f32 0.5, %v4040_v29 }
 0x2da   : > { %v1925_v56 = vadd.f32 1.0, %v2752_v58  ;;  %2761 = vtanh.f32 %v1898_v59  ;;  %v1818_v62 = vmul.f32 0.5, %v4052_v16  ;;  %v1820_v23 = vmul.f32 0.5, %v4066_v39 }
 0x2db   : > { %1952 = vxpose.xlu0.b32.cont [4/16] %v1936_v21, 128  ;;  %v2754_v52 = vpop.eup %2753  ;;  %v1899_v60 = vmul.f32 0.7978846, %v1883_v34  ;;  %v1884_v28 = vadd.f32 %v1868_v3, %v4066_v39 }
 0x2dc   : > { %v1941_v45 = vmul.f32 %v1925_v56, %v1813_v32  ;;  %v1926_v61 = vadd.f32 1.0, %v2754_v52 }
 0x2dd   : > { %2763 = vtanh.f32 %v1899_v60  ;;  %v1900_v63 = vmul.f32 0.7978846, %v1884_v28 }
 0x2de   : > { %v2756_v15 = vpop.eup %2755  ;;  %v1942_v54 = vmul.f32 %v1926_v61, %v1814_v27 }
 0x2df   : > { %1953 = vxpose.xlu0.b32.cont [5/16] %v1937_v9, 128  ;;  %v1927_v25 = vadd.f32 1.0, %v2756_v15  ;;  %2765 = vtanh.f32 %v1900_v63  ;;  %v1819_v9 = vmul.f32 0.5, %v4054_v33 }
 0x2e0   : > { %v2758_v4 = vpop.eup %2757 }
 0x2e1   : > { %v1943_v20 = vmul.f32 %v1927_v25, %v1815_v31  ;;  %v1928_v37 = vadd.f32 1.0, %v2758_v4 }
 0x2e2   : > { %v2760_v21 = vpop.eup %2759 }
 0x2e3   : > { %1954 = vxpose.xlu0.b32.cont [6/16] %v1938_v30, 128  ;;  %v1944_v49 = vmul.f32 %v1928_v37, %v1816_v11  ;;  %v1929_v14 = vadd.f32 1.0, %v2760_v21 }
 0x2e4   : > { %v2762_v1 = vpop.eup %2761 }
 0x2e5   : > { %v1945_v40 = vmul.f32 %v1929_v14, %v1817_v17  ;;  %v1930_v19 = vadd.f32 1.0, %v2762_v1 }
 0x2e7   : > { %1955 = vxpose.xlu0.b32.cont [7/16] %v1939_v22, 128  ;;  %v2764_v35 = vpop.eup %2763  ;;  %v1946_v38 = vmul.f32 %v1930_v19, %v1818_v62 }
 0x2e8   : > { %v1931_v36 = vadd.f32 1.0, %v2764_v35 }
 0x2e9   : > { %v2766_v2 = vpop.eup %2765 }
 0x2ea   : > { %v1947_v47 = vmul.f32 %v1931_v36, %v1819_v9  ;;  %v1932_v43 = vadd.f32 1.0, %v2766_v2 }
 0x2eb   : > { %1956 = vxpose.xlu0.b32.cont [8/16] %v1940_v41, 128 }
 0x2ec   : > { %v1948_v18 = vmul.f32 %v1932_v43, %v1820_v23 }
 0x2ef   : > { %1957 = vxpose.xlu0.b32.cont [9/16] %v1941_v45, 128 }
 0x2f3   : > { %1958 = vxpose.xlu0.b32.cont [10/16] %v1942_v54, 128 }
 0x2f7   : > { %1959 = vxpose.xlu0.b32.cont [11/16] %v1943_v20, 128 }
 0x2fb   : > { %1960 = vxpose.xlu0.b32.cont [12/16] %v1944_v49, 128 }
 0x2ff   : > { %1961 = vxpose.xlu0.b32.cont [13/16] %v1945_v40, 128 }
 0x303   : > { %1962 = vxpose.xlu0.b32.cont [14/16] %v1946_v38, 128 }
 0x307   : > { %1963 = vxpose.xlu0.b32.cont [15/16] %v1947_v47, 128 }
 0x30b   : > { %1964 = vxpose.xlu0.b32.end [16/16] %v1948_v18, 128 }
 0x34f   : > { %v1965_v29 = vpop.trf.xlu0 }
 0x350   : > { %2511 = vmatprep.mubr.f32.mxu0 %v1965_v29 }
 0x353   : > { %v1966_v55 = vpop.trf.xlu0 }
 0x354   : > { %2512 = vmatmul.mubr.f32.vlgmr.msra.gmra.mrb[16].mxu0 %v1966_v55 }
 0x357   : > { %v1967_v0 = vpop.trf.xlu0 }
 0x358   : > { %2514 = vmatprep.mubr.f32.mxu0 %v1967_v0 }
 0x35b   : > { %v1968_v16 = vpop.trf.xlu0 }
 0x35c   : > { %2515 = vmatmul.mubr.f32.gmra.mrb[18].mxu0 %v1968_v16 }
 0x35f   : > { %v1969_v26 = vpop.trf.xlu0 }
 0x360   : > { %2517 = vmatprep.mubr.f32.mxu0 %v1969_v26 }
 0x363   : > { %v1970_v12 = vpop.trf.xlu0 }
 0x364   : > { %2518 = vmatmul.mubr.f32.gmra.mrb[20].mxu0 %v1970_v12 }
 0x367   : > { %v1971_v33 = vpop.trf.xlu0 }
 0x368   : > { %2520 = vmatprep.mubr.f32.mxu0 %v1971_v33 }
 0x36b   : > { %v1972_v46 = vpop.trf.xlu0 }
 0x36c   : > { %2521 = vmatmul.mubr.f32.gmra.mrb[22].mxu0 %v1972_v46 }
 0x36f   : > { %v1973_v30 = vpop.trf.xlu0 }
 0x370   : > { %2523 = vmatprep.mubr.f32.mxu0 %v1973_v30 }
 0x373   : > { %v1974_v39 = vpop.trf.xlu0 }
 0x374   : > { %2524 = vmatmul.mubr.f32.gmra.mrb[24].mxu0 %v1974_v39 }
 0x377   : > { %v1975_v48 = vpop.trf.xlu0 }
 0x378   : > { %2526 = vmatprep.mubr.f32.mxu0 %v1975_v48 }
 0x37b   : > { %v1976_v50 = vpop.trf.xlu0 }
 0x37c   : > { %2527 = vmatmul.mubr.f32.gmra.mrb[26].mxu0 %v1976_v50 }
 0x37f   : > { %v1977_v13 = vpop.trf.xlu0 }
 0x380   : > { %2529 = vmatprep.mubr.f32.mxu0 %v1977_v13 }
 0x383   : > { %v1978_v44 = vpop.trf.xlu0 }
 0x384   : > { %2530 = vmatmul.mubr.f32.gmra.mrb[28].mxu0 %v1978_v44 }
 0x387   : > { %v1979_v6 = vpop.trf.xlu0 }
 0x388   : > { %2532 = vmatprep.mubr.f32.mxu1 %v1979_v6 }
 0x38b   : > { %v1980_v57 = vpop.trf.xlu0 }
 0x38c   : > { %2533 = vmatmul.mubr.f32.vlgmr.msra.gmra.mrb[16].mxu1 %v1980_v57 }
 0x427   : > { %v2513_v24 = vpop.f32.mrb[16].mxu0 }
 0x428   : > { %v2076_v22 = vadd.f32 %v2513_v24, %v2297_v51  ;;  %v2070_v5 = vpop.f32.mrb[17].mxu0 }
 0x429   : > { %v2071_v58 = vadd.f32 %v2297_v51, %v2070_v5 }
 0x42a   : > { %2150 = vst [vmem:[%s4092_s17 + $0x8] sm:$0xff] %v2076_v22 }
 0x42b   : > { %2149 = vst [vmem:[%s4092_s17] sm:$0xff] %v2071_v58 }
 0x42f   : > { %v2516_v53 = vpop.f32.mrb[18].mxu0 }
 0x430   : > { %v2086_v10 = vadd.f32 %v2516_v53, %v2297_v51  ;;  %v2080_v7 = vpop.f32.mrb[19].mxu0 }
 0x431   : > { %v2081_v42 = vadd.f32 %v2297_v51, %v2080_v7 }
 0x432   : > { %2152 = vst [vmem:[%s4092_s17 + $0x18] sm:$0xff] %v2086_v10 }
 0x433   : > { %2151 = vst [vmem:[%s4092_s17 + $0x10] sm:$0xff] %v2081_v42 }
 0x437   : > { %v2519_v8 = vpop.f32.mrb[20].mxu0 }
 0x438   : > { %v2096_v52 = vadd.f32 %v2519_v8, %v2297_v51  ;;  %v2090_v41 = vpop.f32.mrb[21].mxu0 }
 0x439   : > { %v2091_v56 = vadd.f32 %v2297_v51, %v2090_v41 }
 0x43a   : > { %2154 = vst [vmem:[%s4092_s17 + $0x28] sm:$0xff] %v2096_v52 }
 0x43b   : > { %2153 = vst [vmem:[%s4092_s17 + $0x20] sm:$0xff] %v2091_v56 }
 0x43f   : > { %v2522_v32 = vpop.f32.mrb[22].mxu0 }
 0x440   : > { %v2106_v59 = vadd.f32 %v2522_v32, %v2297_v51  ;;  %v2100_v34 = vpop.f32.mrb[23].mxu0 }
 0x441   : > { %v2101_v3 = vadd.f32 %v2297_v51, %v2100_v34 }
 0x442   : > { %2156 = vst [vmem:[%s4092_s17 + $0x38] sm:$0xff] %v2106_v59 }
 0x443   : > { %2155 = vst [vmem:[%s4092_s17 + $0x30] sm:$0xff] %v2101_v3 }
 0x447   : > { %v2525_v15 = vpop.f32.mrb[24].mxu0 }
 0x448   : > { %v2116_v45 = vadd.f32 %v2525_v15, %v2297_v51  ;;  %v2110_v61 = vpop.f32.mrb[25].mxu0 }
 0x449   : > { %v2111_v27 = vadd.f32 %v2297_v51, %v2110_v61 }
 0x44a   : > { %2158 = vst [vmem:[%s4092_s17 + $0x48] sm:$0xff] %v2116_v45 }
 0x44b   : > { %2157 = vst [vmem:[%s4092_s17 + $0x40] sm:$0xff] %v2111_v27 }
 0x44f   : > { %v2528_v60 = vpop.f32.mrb[26].mxu0 }
 0x450   : > { %v2126_v28 = vadd.f32 %v2528_v60, %v2297_v51  ;;  %v2120_v4 = vpop.f32.mrb[27].mxu0 }
 0x451   : > { %v2121_v54 = vadd.f32 %v2297_v51, %v2120_v4 }
 0x452   : > { %2160 = vst [vmem:[%s4092_s17 + $0x58] sm:$0xff] %v2126_v28 }
 0x453   : > { %2159 = vst [vmem:[%s4092_s17 + $0x50] sm:$0xff] %v2121_v54 }
 0x457   : > { %v2531_v25 = vpop.f32.mrb[28].mxu0 }
 0x458   : > { %v2136_v31 = vadd.f32 %v2531_v25, %v2297_v51  ;;  %v2130_v63 = vpop.f32.mrb[29].mxu0 }
 0x459   : > { %v2131_v20 = vadd.f32 %v2297_v51, %v2130_v63 }
 0x45a   : > { %2162 = vst [vmem:[%s4092_s17 + $0x68] sm:$0xff] %v2136_v31 }
 0x45b   : > { %2161 = vst [vmem:[%s4092_s17 + $0x60] sm:$0xff] %v2131_v20 }
 0x45d   : > { %2172 = sbr.rel (!%p2987_p8) target bundleno = 1156 (0x484), region = 106 }
 0x45f   : > { %v2534_v37 = vpop.f32.mrb[16].mxu1 }
 0x460   : > { %v2146_v21 = vadd.f32 %v2534_v37, %v2297_v51  ;;  %v2140_v11 = vpop.f32.mrb[17].mxu1 }
 0x461   : > { %v2141_v49 = vadd.f32 %v2297_v51, %v2140_v11 }
 0x462   : > { %2164 = vst [vmem:[%s4092_s17 + $0x78] sm:$0xff] %v2146_v21 }
 0x463   : > { %2163 = vst [vmem:[%s4092_s17 + $0x70] sm:$0xff] %v2141_v49 }
 0x464   : > { %s4231_s16 = smov (!%p2175_p1, %s2174_s16), 16 }
 0x465   : > { %s4114_s29 = sshll.u32 %s4231_s16, 7 }
 0x466   : > { %s2179_s14 = ssub.s32 2048, %s4114_s29 }
 0x467   : > { %2180 = vsyncadd %s4200_s25, %s2179_s14  ;;  %p2301_p2 = scmp.ne.s32.totalorder %s4114_s29, 0  ;;  %s2623_s12 = smul.u32 18, %s2849_s21 }
 0x468   : > { %s2187_s15 = sshll.u32 %s4092_s17, 4  ;;  %s4211_s16 = sld [smem:[#allocation11_spill]]  ;;  %s4122_s15 = int_to_ptr.vmem [resolvable:$true] %s2187_s15 }
 0x469   : > { %s2183_s11 = sadd.s32 %s2623_s12, %s2299_s26  ;;  %s2767_s14 = scalar_lea.vmem %s4122_s15, %s4114_s29 }
 0x46a   : > { %s2302_s20 = sshll.u32 %s2183_s11, 7  ;;  %p2768_p3 = scmp.ne.s32.totalorder %s4122_s15, %s2767_s14 }
 0x46b   : > { %s2864_s25 = smov [#allocation3]  }
 0x46c   : > { %p2769_p4 = pnand %p2768_p3, %p2301_p2  ;;  %s2771_s21 = sshll.u32 %s2864_s25, 4  ;;  %s2772_s21 = int_to_ptr.vmem [resolvable:$false] %s2771_s21 }
 0x46d   : > { %s2773_s17 = scalar_lea.vmem %s2772_s21, 4096  ;;  %p2774_p6 = scmp.lt.s32.totalorder %s4122_s15, %s2772_s21 }
 0x46e   : > { %s4127_s0 = scalar_lea.hbm %s4211_s16, %s2302_s20  ;;  %p2770_p5 = pneg %p2769_p4 }
 0x46f   : > { %p2775_p7 = scmp.lt.s32.totalorder %s2773_s17, %s2767_s14 }
 0x471   : > { %p2776_p8 = por %p2775_p7, %p2774_p6 }
 0x473   : > { %p2777_p10 = pnand %p2776_p8, %p2770_p5 }
 0x475   : > { %2780 = shalt.err (!%p2777_p10)
}
 0x476   : > { %s2781_s26 = scalar_lea.hbm %s4127_s0, %s4114_s29  ;;  %s2785_s11 = scalar_lea.hbm %s4211_s16, 4608 }
 0x477   : > { %p2782_p11 = scmp.ne.s32.totalorder %s4127_s0, %s2781_s26  ;;  %p2786_p0 = scmp.lt.u32.totalorder %s4127_s0, %s4211_s16 }
 0x478   : > { %p2787_p1 = scmp.lt.u32.totalorder %s2785_s11, %s2781_s26  ;;  %p2789_p4 = scmp.lt.u32.totalorder %s2781_s26, %s4127_s0 }
 0x479   : > { %p2783_p12 = pnand %p2782_p11, %p2301_p2 }
 0x47a   : > { %p2788_p3 = por %p2787_p1, %p2786_p0 }
 0x47b   : > { %p2784_p13 = pneg %p2783_p12 }
 0x47c   : > { %p2790_p5 = por %p2789_p4, %p2788_p3 }
 0x47e   : > { %p2791_p6 = pnand %p2790_p5, %p2784_p13 }
 0x480   : > { %2794 = shalt.err (!%p2791_p6)
}
 0x481   : > { %s2865_s30 = smov 128   ;;  %s2866_s14 = smov 8  }
 0x482   : > { %s4212_s21 = scalar_lea.sflag [#allocation4], %s3019_s13 }
 0x483   : > { %2193 = dma.vmem_to_hbm [thread:$0]  (%p2301_p2), %s4122_s15, %s4114_s29, %s4127_s0, %s4212_s21, %s2865_s30, %s2865_s30, %s2866_s14  }
 0x484 PF: > { %s4213_s17 = sld [smem:[#allocation6_spill]]  ;;  %p2629_p7 = scmp.ge.s32.totalorder %s2861_s24, 2 }
 0x486   : > { %p2626_p8 = pnand %p2629_p7, %p2991_p9 }
 0x48a   : > { %s2202_s26 = sand.u32 1, %s4213_s17  }
 0x48b   : > { %s2203_s25 = scalar_lea.sflag [#allocation4], %s2202_s26 }
 0x48c   : > { %2828 = dma.done.wait (!%p2626_p8), %s2203_s25, 2048  }
 0x48d   : > { %2830 = vsyncadd (!%p2626_p8), %s2203_s25, 4294965248  ;;  %s24_s24 = sadd.s32 1, %s2861_s24   ;;  %s4215_s0 = sld [smem:[#allocation7_spill]] }
 0x48e   : > { %p21_p10 = scmp.ge.s32.totalorder %s24_s24, 6   ;;  %s4216_s13 = sld [smem:[#allocation8_spill]] }
 0x48f   : > { %s4217_s17 = smov %s2837_s18  ;;  %s4218_s18 = smov %s2841_s19 }
 0x490   : > { %s4219_s19 = smov %s2999_s27  ;;  %s4220_s20 = smov %s2853_s22 }
 0x491   : > { %s4221_s21 = smov %s2857_s23  ;;  %23 = sbr.rel (!%p21_p10) target bundleno = 8 (0x8), region = 142 }
 0x493   : > { %s4222_s22 = smov %s4215_s0 }
 0x494   : > { %s4223_s23 = smov %s4216_s13 }
 0x498   :  { %2208 = vsyncpa [#allocation4], 1 }
 0x499   :  { %2210 = vsyncpa [#allocation4 + $0x1], 1 }

</bundles_post_ra>
